<compile_context>
chip_gen: v7x
topology: tpu7x:2x2x1
jax: 0.10.0
libtpu: 0.0.40
codegen_flags: <defaults>
</compile_context>

<pallas_src>
import functools
import math

import jax
import jax.numpy as jnp
from jax.experimental import pallas as pl
from jax.experimental.pallas import tpu as pltpu


# --------------------------------------------------------------------------
# helpers shared by kernel, wrapper and reference
# --------------------------------------------------------------------------
def _layer_norm(h, gamma, beta, eps=1e-5):
    mu = jnp.mean(h, axis=-1, keepdims=True)
    d = h - mu
    var = jnp.mean(d * d, axis=-1, keepdims=True)
    return d * jax.lax.rsqrt(var + eps) * gamma + beta


def _silu(h):
    return h * jax.nn.sigmoid(h)


def _sinusoidal_embedding(time, dim):
    # SinusoidalPositionalEmbedding (wrapper-side: tiny elementwise op).
    # Note: divides by (half-1) exactly like the PyTorch module (dim==2 is
    # degenerate there too).
    half = dim // 2
    freqs = jnp.exp(jnp.arange(half, dtype=jnp.float32)
                    * (-math.log(10000.0) / (half - 1)))
    ang = time.astype(jnp.float32)[:, None] * freqs[None, :]
    emb = jnp.concatenate([jnp.sin(ang), jnp.cos(ang)], axis=-1)
    if dim % 2 == 1:
        emb = jnp.pad(emb, ((0, 0), (0, 1)))
    return emb


def _device_kind():
    try:
        return jax.devices()[0].device_kind.lower()
    except Exception:
        return ""


# --------------------------------------------------------------------------
# Pallas kernel: one grid step == one LiquidLayer applied to one batch block
# --------------------------------------------------------------------------
def _liquid_network_kernel(num_heads, head_dim, bb, S, H,
                           x_ref, wqkv_ref, wprj_ref, wf1_ref, wf2_ref,
                           vec_ref, o_ref, xs_ref):
    l = pl.program_id(1)
    n_layers = pl.num_programs(1)
    D = head_dim
    N = bb * S                       # tokens per grid step (batch collapsed)
    scale = 1.0 / math.sqrt(D)

    # layer 0: seed the carried activation state from the input block.
    @pl.when(l == 0)
    def _init():
        xs_ref[...] = x_ref[...].astype(jnp.float32).reshape(N, H)

    x2 = xs_ref[...]                                              # (N, H) f32

    # One DMA worth of per-layer vectors: rows are
    # [bqkv(3H), bprj, g1, be1, bf1(4H), bf2, g2, be2], lane-padded to 4H.
    vecs = vec_ref[...]                                           # (8, 4H) f32
    bqkv = vecs[0:1, :3 * H]
    bprj = vecs[1:2, :H]
    g1, be1 = vecs[2:3, :H], vecs[3:4, :H]
    bf1 = vecs[4:5, :]
    bf2, g2, be2 = vecs[5:6, :H], vecs[6:7, :H], vecs[7:8, :H]

    # ---- LiquidAttention -------------------------------------------------
    # Fused QKV: one (N,H)@(H,3H) bf16 matmul, f32 accumulation.
    qkv = jnp.dot(x2.astype(jnp.bfloat16), wqkv_ref[...],
                  preferred_element_type=jnp.float32) + bqkv      # (N, 3H)

    wp_full = wprj_ref[...]                                       # (H, H) bf16

    # Per-head attention; the head merge is fused into the projection by
    # accumulating ctx_h @ Wp_h directly into a single (N, H) f32 buffer
    # (no (heads,S,H) temporary, no concat, no weight broadcast).
    attn = jnp.zeros((N, H), jnp.float32)
    for h in range(num_heads):          # static unroll, num_heads is small
        q = qkv[:, h * D:(h + 1) * D].reshape(bb, S, D) * scale
        k = qkv[:, H + h * D:H + (h + 1) * D].reshape(bb, S, D)
        v = qkv[:, 2 * H + h * D:2 * H + (h + 1) * D].reshape(bb, S, D)

        scores = jax.lax.dot_general(
            q, k, dimension_numbers=(((2,), (2,)), ((0,), (0,))),
            preferred_element_type=jnp.float32)                   # (bb, S, S)
        # TODO(synk): optional `mask` argument (mask==0 -> -1e9 fill) of the
        # PyTorch module is not wired in (mask=None path).
        scores = scores - jnp.max(scores, axis=-1, keepdims=True)
        p = jnp.exp(scores)
        denom = jnp.sum(p, axis=-1, keepdims=True)
        r = pl.reciprocal(denom, approx=True)      # EUP slot (otherwise idle)
        r = r * (2.0 - denom * r)                  # Newton step -> ~f32 acc.
        p = p * r
        # Dropout(p) is identity in eval mode.
        ctx = jax.lax.dot_general(
            p, v, dimension_numbers=(((2,), (1,)), ((0,), (0,))),
            preferred_element_type=jnp.float32)                   # (bb, S, D)

        attn = attn + jnp.dot(
            ctx.reshape(N, D).astype(jnp.bfloat16),
            wp_full[h * D:(h + 1) * D, :],
            preferred_element_type=jnp.float32)                   # (N, H)
    attn = attn + bprj

    # Residual + LayerNorm 1
    h1 = _layer_norm(x2 + attn, g1, be1)

    # Feed-forward: Linear(H,4H) -> SiLU -> Linear(4H,H), bf16 MXU, f32 acc.
    f = jnp.dot(h1.astype(jnp.bfloat16), wf1_ref[...],
                preferred_element_type=jnp.float32) + bf1
    f = _silu(f)
    f = jnp.dot(f.astype(jnp.bfloat16), wf2_ref[...],
                preferred_element_type=jnp.float32) + bf2

    # Residual + LayerNorm 2; carry the state to the next layer step.
    h2 = _layer_norm(h1 + f, g2, be2)
    xs_ref[...] = h2

    # last layer: write the resident output block (pre output-projection,
    # which is hoisted to the wrapper).
    @pl.when(l == n_layers - 1)
    def _final():
        o_ref[...] = h2.reshape(bb, S, H).astype(o_ref.dtype)


# --------------------------------------------------------------------------
# wrapper: parameter packing + pallas_call
# --------------------------------------------------------------------------
def _pack_params(params, num_heads):
    H = params["wt2"].shape[0]
    D = H // num_heads
    W4 = 4 * H

    def row(v):
        v = jnp.reshape(v, (-1,)).astype(jnp.float32)
        return jnp.pad(v, (0, W4 - v.shape[0]))

    wqkv, wprj, wf1, wf2, vecs = [], [], [], [], []
    for lp in params["layers"]:
        wqkv.append(jnp.concatenate([lp["wq"], lp["wk"], lp["wv"]],
                                    axis=1).astype(jnp.bfloat16))   # (H, 3H)
        wprj.append(lp["wp"].astype(jnp.bfloat16))                  # (H, H)
        wf1.append(lp["wf1"].astype(jnp.bfloat16))                  # (H, 4H)
        wf2.append(lp["wf2"].astype(jnp.bfloat16))                  # (4H, H)
        bqkv = jnp.concatenate([lp["bq"], lp["bk"], lp["bv"]], axis=1)
        vecs.append(jnp.stack(
            [row(bqkv), row(lp["bp"]), row(lp["g1"]), row(lp["be1"]),
             row(lp["bf1"]), row(lp["bf2"]), row(lp["g2"]), row(lp["be2"])],
            axis=0))                                                # (8, 4H)

    return dict(wqkv=jnp.stack(wqkv), wprj=jnp.stack(wprj),
                wf1=jnp.stack(wf1), wf2=jnp.stack(wf2),
                vecs=jnp.stack(vecs))


def liquid_network(x, time_steps, params, num_heads):
    """x: (B, S, H) f32, time_steps: (B,) f32. Weights are (in, out) layouts."""
    B, S, H = x.shape
    D = H // num_heads
    assert D * num_heads == H
    L = len(params["layers"])
    Td = params["wt1"].shape[0]

    kind = _device_kind()
    is_v7 = "v7" in kind
    # Split the batch across TensorCores only where there are 2 of them (v7x);
    # on single-TC v5e/v6e a second block just doubles grid-step overhead.
    b_blocks = 2 if (is_v7 and B >= 2 and B % 2 == 0) else 1
    bb = B // b_blocks
    if is_v7:
        vmem_limit = 48 << 20           # leave headroom under 64 MiB physical
    elif ("v5" in kind) or ("v6" in kind):
        vmem_limit = 100 << 20          # 128 MiB physical
    else:
        vmem_limit = None               # unknown part: keep compiler default

    # One-shot time-embedding MLP hoisted out of the kernel (plain XLA): its
    # weights would otherwise sit resident/double-buffered for the whole grid.
    temb = _sinusoidal_embedding(time_steps, Td)
    temb = _silu(temb @ params["wt1"] + params["bt1"])
    temb = temb @ params["wt2"] + params["bt2"]                     # (B, H)
    x_in = x + temb[:, None, :]

    pk = _pack_params(params, num_heads)
    kernel = functools.partial(_liquid_network_kernel, num_heads, D, bb, S, H)

    def layer_spec(shape):
        nd = len(shape)
        return pl.BlockSpec((None,) + shape, lambda b, l: (l,) + (0,) * nd)

    in_specs = [
        pl.BlockSpec((bb, S, H), lambda b, l: (b, 0, 0)),           # x_in
        layer_spec((H, 3 * H)),                                     # wqkv (bf16)
        layer_spec((H, H)),                                         # wprj (bf16)
        layer_spec((H, 4 * H)),                                     # wf1  (bf16)
        layer_spec((4 * H, H)),                                     # wf2  (bf16)
        layer_spec((8, 4 * H)),                                     # packed vecs
    ]

    hidden = pl.pallas_call(
        kernel,
        out_shape=jax.ShapeDtypeStruct((B, S, H), x.dtype),
        grid_spec=pltpu.PrefetchScalarGridSpec(
            num_scalar_prefetch=0,
            grid=(b_blocks, L),
            in_specs=in_specs,
            out_specs=pl.BlockSpec((bb, S, H), lambda b, l: (b, 0, 0)),
            scratch_shapes=[pltpu.VMEM((bb * S, H), jnp.float32)],
        ),
        compiler_params=pltpu.CompilerParams(
            dimension_semantics=("parallel", "arbitrary"),
            vmem_limit_bytes=vmem_limit),
    )(x_in, pk["wqkv"], pk["wprj"], pk["wf1"], pk["wf2"], pk["vecs"])

    # One-shot final output projection, also hoisted out of the kernel.
    return hidden @ params["wout"] + params["bout"]


# --------------------------------------------------------------------------
# pure-JAX reference (mirrors the PyTorch forward; mask=None, eval mode).
# bf16_matmuls=True mirrors the kernel's mixed-precision policy
# (bf16 matmul inputs for the per-layer projections, f32 accumulation).
# --------------------------------------------------------------------------
def _reference(x, time_steps, params, num_heads, bf16_matmuls=False):
    B, S, H = x.shape
    D = H // num_heads
    Td = params["wt1"].shape[0]
    hi = jax.lax.Precision.HIGHEST

    def mm(a, w):
        if bf16_matmuls:
            a = a.astype(jnp.bfloat16)
            w = w.astype(jnp.bfloat16)
        return jnp.dot(a, w, preferred_element_type=jnp.float32, precision=hi)

    te = _sinusoidal_embedding(time_steps, Td)
    h = _silu(te @ params["wt1"] + params["bt1"])
    temb = h @ params["wt2"] + params["bt2"]
    x = x + temb[:, None, :]

    for lp in params["layers"]:
        q = mm(x, lp["wq"]) + lp["bq"]
        k = mm(x, lp["wk"]) + lp["bk"]
        v = mm(x, lp["wv"]) + lp["bv"]
        q = q.reshape(B, S, num_heads, D).transpose(0, 2, 1, 3)
        k = k.reshape(B, S, num_heads, D).transpose(0, 2, 1, 3)
        v = v.reshape(B, S, num_heads, D).transpose(0, 2, 1, 3)
        scores = jnp.einsum("bhqd,bhkd->bhqk", q, k,
                            precision=hi) / math.sqrt(D)
        attn = jax.nn.softmax(scores, axis=-1)
        ctx = jnp.einsum("bhqk,bhkd->bhqd", attn, v, precision=hi)
        ctx = ctx.transpose(0, 2, 1, 3).reshape(B, S, H)
        a = mm(ctx, lp["wp"]) + lp["bp"]
        x = _layer_norm(x + a, lp["g1"], lp["be1"])
        f = _silu(mm(x, lp["wf1"]) + lp["bf1"])
        f = mm(f, lp["wf2"]) + lp["bf2"]
        x = _layer_norm(x + f, lp["g2"], lp["be2"])

    return x @ params["wout"] + params["bout"]


# --------------------------------------------------------------------------
# deterministic synthetic parameters (weights stored transposed: (in, out))
# --------------------------------------------------------------------------
def init_params(key, hidden_size, num_layers, time_dim):
    H = hidden_size

    def lin(k, fan_in, fan_out):
        kw, kb = jax.random.split(k)
        w = 0.2 * jax.random.normal(kw, (fan_in, fan_out), jnp.float32)
        b = 0.1 * jax.random.normal(kb, (1, fan_out), jnp.float32)
        return w, b

    keys = jax.random.split(key, 3 + num_layers)
    wt1, bt1 = lin(keys[0], time_dim, H)
    wt2, bt2 = lin(keys[1], H, H)
    wout, bout = lin(keys[2], H, H)

    layers = []
    for i in range(num_layers):
        lk = jax.random.split(keys[3 + i], 10)
        wq, bq = lin(lk[0], H, H)
        wk, bk = lin(lk[1], H, H)
        wv, bv = lin(lk[2], H, H)
        wp, bp = lin(lk[3], H, H)
        wf1, bf1 = lin(lk[4], H, 4 * H)
        wf2, bf2 = lin(lk[5], 4 * H, H)
        g1 = 1.0 + 0.1 * jax.random.normal(lk[6], (1, H), jnp.float32)
        be1 = 0.1 * jax.random.normal(lk[7], (1, H), jnp.float32)
        g2 = 1.0 + 0.1 * jax.random.normal(lk[8], (1, H), jnp.float32)
        be2 = 0.1 * jax.random.normal(lk[9], (1, H), jnp.float32)
        layers.append(dict(wq=wq, bq=bq, wk=wk, bk=bk, wv=wv, bv=bv,
                           wp=wp, bp=bp, wf1=wf1, bf1=bf1, wf2=wf2, bf2=bf2,
                           g1=g1, be1=be1, g2=g2, be2=be2))
    return dict(wt1=wt1, bt1=bt1, wt2=wt2, bt2=bt2,
                wout=wout, bout=bout, layers=layers)


if __name__ == "__main__":
    batch, seq_len, hidden, heads, layers, time_dim = 2, 8, 32, 4, 2, 16

    key = jax.random.PRNGKey(0)
    kx, kt, kp = jax.random.split(key, 3)
    x = jax.random.normal(kx, (batch, seq_len, hidden), jnp.float32)
    time_steps = jax.random.uniform(kt, (batch,), jnp.float32, 0.0, 100.0)
    params = init_params(kp, hidden, layers, time_dim)

    out = liquid_network(x, time_steps, params, num_heads=heads)
    out = jax.block_until_ready(out)
    assert out.shape == (batch, seq_len, hidden)

    # Tight check vs a reference with the same mixed-precision matmul policy.
    ref_mp = _reference(x, time_steps, params, heads, bf16_matmuls=True)
    err_mp = float(jnp.max(jnp.abs(out - ref_mp)))
    assert jnp.allclose(out, ref_mp, atol=2e-3, rtol=2e-3), (
        f"mismatch vs mixed-precision reference (max abs err {err_mp})")

    # Loose sanity check vs the pure-f32 module semantics (bf16 rounding only).
    ref_f32 = _reference(x, time_steps, params, heads, bf16_matmuls=False)
    err_f32 = float(jnp.max(jnp.abs(out - ref_f32)))
    assert err_f32 < 2e-1, (
        f"mismatch vs f32 reference beyond bf16 rounding budget ({err_f32})")

    print("KERNEL_OK")
</pallas_src>

<mosaic_0001>
module attributes {stable_mosaic.version = 11 : i64} {
  func.func @_liquid_network_kernel(%arg0: i32, %arg1: i32, %arg2: memref<2x8x32xf32, #tpu.memory_space<vmem>>, %arg3: memref<1x32x96xbf16, #tpu.memory_space<vmem>>, %arg4: memref<1x32x32xbf16, #tpu.memory_space<vmem>>, %arg5: memref<1x32x128xbf16, #tpu.memory_space<vmem>>, %arg6: memref<1x128x32xbf16, #tpu.memory_space<vmem>>, %arg7: memref<1x8x128xf32, #tpu.memory_space<vmem>>, %arg8: memref<2x8x32xf32, #tpu.memory_space<vmem>>, %arg9: memref<16x32xf32, #tpu.memory_space<vmem>>) attributes {dimension_semantics = [#tpu.dimension_semantics<parallel>, #tpu.dimension_semantics<arbitrary>], iteration_bounds = array<i64: 1, 2>, scalar_prefetch = 0 : i64, scratch_operands = 1 : i64, tpu.core_type = #tpu.core_type<tc>, window_params = [{transform_indices = @transform_0, window_bounds = array<i64: 2, 8, 32>}, {transform_indices = @transform_1, window_bounds = array<i64: 1, 32, 96>}, {transform_indices = @transform_2, window_bounds = array<i64: 1, 32, 32>}, {transform_indices = @transform_3, window_bounds = array<i64: 1, 32, 128>}, {transform_indices = @transform_4, window_bounds = array<i64: 1, 128, 32>}, {transform_indices = @transform_5, window_bounds = array<i64: 1, 8, 128>}, {transform_indices = @transform_6, window_bounds = array<i64: 2, 8, 32>}]} {
    %c0_i32 = arith.constant 0 : i32
    %0 = arith.cmpi eq, %arg1, %c0_i32 : i32
    %1 = arith.extui %0 : i1 to i32
    %c0_i32_0 = arith.constant 0 : i32
    %2 = arith.cmpi ne, %1, %c0_i32_0 : i32
    scf.if %2 {
      %c0_62 = arith.constant 0 : index
      %c0_63 = arith.constant 0 : index
      %c0_64 = arith.constant 0 : index
      %205 = vector.load %arg2[%c0_62, %c0_63, %c0_64] : memref<2x8x32xf32, #tpu.memory_space<vmem>>, vector<2x8x32xf32>
      %206 = vector.shape_cast %205 : vector<2x8x32xf32> to vector<16x32xf32>
      %c0_65 = arith.constant 0 : index
      %c0_66 = arith.constant 0 : index
      %207 = vector.load %arg9[%c0_65, %c0_66] : memref<16x32xf32, #tpu.memory_space<vmem>>, vector<16x32xf32>
      tpu.vector_store %arg9[%c0_65, %c0_66], %206 {strides = array<i32>} : memref<16x32xf32, #tpu.memory_space<vmem>>, vector<16x32xf32>,
    } else {
    }
    %c0 = arith.constant 0 : index
    %c0_1 = arith.constant 0 : index
    %3 = vector.load %arg9[%c0, %c0_1] : memref<16x32xf32, #tpu.memory_space<vmem>>, vector<16x32xf32>
    %c0_2 = arith.constant 0 : index
    %c0_3 = arith.constant 0 : index
    %c0_4 = arith.constant 0 : index
    %4 = vector.load %arg7[%c0_2, %c0_3, %c0_4] : memref<1x8x128xf32, #tpu.memory_space<vmem>>, vector<1x8x128xf32>
    %5 = vector.shape_cast %4 : vector<1x8x128xf32> to vector<8x128xf32>
    %6 = vector.extract_strided_slice %5 {offsets = [0, 0], sizes = [1, 96], strides = [1, 1]} : vector<8x128xf32> to vector<1x96xf32>
    %7 = vector.extract_strided_slice %5 {offsets = [1, 0], sizes = [1, 32], strides = [1, 1]} : vector<8x128xf32> to vector<1x32xf32>
    %8 = vector.extract_strided_slice %5 {offsets = [2, 0], sizes = [1, 32], strides = [1, 1]} : vector<8x128xf32> to vector<1x32xf32>
    %9 = vector.extract_strided_slice %5 {offsets = [3, 0], sizes = [1, 32], strides = [1, 1]} : vector<8x128xf32> to vector<1x32xf32>
    %10 = vector.extract_strided_slice %5 {offsets = [4, 0], sizes = [1, 128], strides = [1, 1]} : vector<8x128xf32> to vector<1x128xf32>
    %11 = vector.extract_strided_slice %5 {offsets = [5, 0], sizes = [1, 32], strides = [1, 1]} : vector<8x128xf32> to vector<1x32xf32>
    %12 = vector.extract_strided_slice %5 {offsets = [6, 0], sizes = [1, 32], strides = [1, 1]} : vector<8x128xf32> to vector<1x32xf32>
    %13 = vector.extract_strided_slice %5 {offsets = [7, 0], sizes = [1, 32], strides = [1, 1]} : vector<8x128xf32> to vector<1x32xf32>
    %14 = arith.truncf %3 : vector<16x32xf32> to vector<16x32xbf16>
    %c0_5 = arith.constant 0 : index
    %c0_6 = arith.constant 0 : index
    %c0_7 = arith.constant 0 : index
    %15 = vector.load %arg3[%c0_5, %c0_6, %c0_7] : memref<1x32x96xbf16, #tpu.memory_space<vmem>>, vector<1x32x96xbf16>
    %16 = vector.shape_cast %15 : vector<1x32x96xbf16> to vector<32x96xbf16>
    %cst = arith.constant dense<0.000000e+00> : vector<16x96xf32>
    %17 = tpu.matmul %14, %16, %cst {dimension_numbers = #tpu.dot_dimension_numbers<[1], [0], [0], [1], [0, 0, 1, 1], [], []>} : vector<16x32xbf16>, vector<32x96xbf16>, vector<16x96xf32> -> vector<16x96xf32>
    %18 = vector.broadcast %6 : vector<1x96xf32> to vector<16x96xf32>
    %19 = arith.addf %17, %18 : vector<16x96xf32>
    %c0_8 = arith.constant 0 : index
    %c0_9 = arith.constant 0 : index
    %c0_10 = arith.constant 0 : index
    %20 = vector.load %arg4[%c0_8, %c0_9, %c0_10] : memref<1x32x32xbf16, #tpu.memory_space<vmem>>, vector<1x32x32xbf16>
    %21 = vector.shape_cast %20 : vector<1x32x32xbf16> to vector<32x32xbf16>
    %cst_11 = arith.constant 0.000000e+00 : f32
    %22 = vector.broadcast %cst_11 : f32 to vector<16x32xf32>
    %23 = vector.extract_strided_slice %19 {offsets = [0, 0], sizes = [16, 8], strides = [1, 1]} : vector<16x96xf32> to vector<16x8xf32>
    %24 = vector.shape_cast %23 : vector<16x8xf32> to vector<2x8x8xf32>
    %cst_12 = arith.constant 0.353553385 : f32
    %25 = vector.broadcast %cst_12 : f32 to vector<2x8x8xf32>
    %26 = arith.mulf %24, %25 : vector<2x8x8xf32>
    %27 = vector.extract_strided_slice %19 {offsets = [0, 32], sizes = [16, 8], strides = [1, 1]} : vector<16x96xf32> to vector<16x8xf32>
    %28 = vector.shape_cast %27 : vector<16x8xf32> to vector<2x8x8xf32>
    %29 = vector.extract_strided_slice %19 {offsets = [0, 64], sizes = [16, 8], strides = [1, 1]} : vector<16x96xf32> to vector<16x8xf32>
    %30 = vector.shape_cast %29 : vector<16x8xf32> to vector<2x8x8xf32>
    %cst_13 = arith.constant dense<0.000000e+00> : vector<2x8x8xf32>
    %31 = tpu.matmul %26, %28, %cst_13 {dimension_numbers = #tpu.dot_dimension_numbers<[2], [2], [1], [1], [0, 0, 0, 1, 1, 1], [0], [0]>} : vector<2x8x8xf32>, vector<2x8x8xf32>, vector<2x8x8xf32> -> vector<2x8x8xf32>
    %cst_14 = arith.constant dense<0xFF800000> : vector<2x8xf32>
    %32 = vector.multi_reduction <maximumf>, %31, %cst_14 [2] : vector<2x8x8xf32> to vector<2x8xf32>
    %33 = vector.shape_cast %32 : vector<2x8xf32> to vector<2x8x1xf32>
    %34 = vector.broadcast %33 : vector<2x8x1xf32> to vector<2x8x8xf32>
    %35 = arith.subf %31, %34 : vector<2x8x8xf32>
    %36 = math.exp %35 : vector<2x8x8xf32>
    %cst_15 = arith.constant dense<0.000000e+00> : vector<2x8xf32>
    %37 = vector.multi_reduction <add>, %36, %cst_15 [2] : vector<2x8x8xf32> to vector<2x8xf32>
    %38 = vector.shape_cast %37 : vector<2x8xf32> to vector<2x8x1xf32>
    %39 = tpu.reciprocal %38 {approx = true} : vector<2x8x1xf32> -> vector<2x8x1xf32>
    %40 = arith.mulf %38, %39 : vector<2x8x1xf32>
    %cst_16 = arith.constant 2.000000e+00 : f32
    %41 = vector.broadcast %cst_16 : f32 to vector<2x8x1xf32>
    %42 = arith.subf %41, %40 : vector<2x8x1xf32>
    %43 = arith.mulf %39, %42 : vector<2x8x1xf32>
    %44 = vector.broadcast %43 : vector<2x8x1xf32> to vector<2x8x8xf32>
    %45 = arith.mulf %36, %44 : vector<2x8x8xf32>
    %cst_17 = arith.constant dense<0.000000e+00> : vector<2x8x8xf32>
    %46 = tpu.matmul %45, %30, %cst_17 {dimension_numbers = #tpu.dot_dimension_numbers<[2], [1], [1], [2], [0, 0, 0, 1, 1, 2], [0], [0]>} : vector<2x8x8xf32>, vector<2x8x8xf32>, vector<2x8x8xf32> -> vector<2x8x8xf32>
    %47 = vector.shape_cast %46 : vector<2x8x8xf32> to vector<16x8xf32>
    %48 = arith.truncf %47 : vector<16x8xf32> to vector<16x8xbf16>
    %49 = vector.extract_strided_slice %21 {offsets = [0, 0], sizes = [8, 32], strides = [1, 1]} : vector<32x32xbf16> to vector<8x32xbf16>
    %cst_18 = arith.constant dense<0.000000e+00> : vector<16x32xf32>
    %50 = tpu.matmul %48, %49, %cst_18 {dimension_numbers = #tpu.dot_dimension_numbers<[1], [0], [0], [1], [0, 0, 1, 1], [], []>} : vector<16x8xbf16>, vector<8x32xbf16>, vector<16x32xf32> -> vector<16x32xf32>
    %51 = arith.addf %22, %50 : vector<16x32xf32>
    %52 = vector.extract_strided_slice %19 {offsets = [0, 8], sizes = [16, 8], strides = [1, 1]} : vector<16x96xf32> to vector<16x8xf32>
    %53 = vector.shape_cast %52 : vector<16x8xf32> to vector<2x8x8xf32>
    %cst_19 = arith.constant 0.353553385 : f32
    %54 = vector.broadcast %cst_19 : f32 to vector<2x8x8xf32>
    %55 = arith.mulf %53, %54 : vector<2x8x8xf32>
    %56 = vector.extract_strided_slice %19 {offsets = [0, 40], sizes = [16, 8], strides = [1, 1]} : vector<16x96xf32> to vector<16x8xf32>
    %57 = vector.shape_cast %56 : vector<16x8xf32> to vector<2x8x8xf32>
    %58 = vector.extract_strided_slice %19 {offsets = [0, 72], sizes = [16, 8], strides = [1, 1]} : vector<16x96xf32> to vector<16x8xf32>
    %59 = vector.shape_cast %58 : vector<16x8xf32> to vector<2x8x8xf32>
    %cst_20 = arith.constant dense<0.000000e+00> : vector<2x8x8xf32>
    %60 = tpu.matmul %55, %57, %cst_20 {dimension_numbers = #tpu.dot_dimension_numbers<[2], [2], [1], [1], [0, 0, 0, 1, 1, 1], [0], [0]>} : vector<2x8x8xf32>, vector<2x8x8xf32>, vector<2x8x8xf32> -> vector<2x8x8xf32>
    %cst_21 = arith.constant dense<0xFF800000> : vector<2x8xf32>
    %61 = vector.multi_reduction <maximumf>, %60, %cst_21 [2] : vector<2x8x8xf32> to vector<2x8xf32>
    %62 = vector.shape_cast %61 : vector<2x8xf32> to vector<2x8x1xf32>
    %63 = vector.broadcast %62 : vector<2x8x1xf32> to vector<2x8x8xf32>
    %64 = arith.subf %60, %63 : vector<2x8x8xf32>
    %65 = math.exp %64 : vector<2x8x8xf32>
    %cst_22 = arith.constant dense<0.000000e+00> : vector<2x8xf32>
    %66 = vector.multi_reduction <add>, %65, %cst_22 [2] : vector<2x8x8xf32> to vector<2x8xf32>
    %67 = vector.shape_cast %66 : vector<2x8xf32> to vector<2x8x1xf32>
    %68 = tpu.reciprocal %67 {approx = true} : vector<2x8x1xf32> -> vector<2x8x1xf32>
    %69 = arith.mulf %67, %68 : vector<2x8x1xf32>
    %cst_23 = arith.constant 2.000000e+00 : f32
    %70 = vector.broadcast %cst_23 : f32 to vector<2x8x1xf32>
    %71 = arith.subf %70, %69 : vector<2x8x1xf32>
    %72 = arith.mulf %68, %71 : vector<2x8x1xf32>
    %73 = vector.broadcast %72 : vector<2x8x1xf32> to vector<2x8x8xf32>
    %74 = arith.mulf %65, %73 : vector<2x8x8xf32>
    %cst_24 = arith.constant dense<0.000000e+00> : vector<2x8x8xf32>
    %75 = tpu.matmul %74, %59, %cst_24 {dimension_numbers = #tpu.dot_dimension_numbers<[2], [1], [1], [2], [0, 0, 0, 1, 1, 2], [0], [0]>} : vector<2x8x8xf32>, vector<2x8x8xf32>, vector<2x8x8xf32> -> vector<2x8x8xf32>
    %76 = vector.shape_cast %75 : vector<2x8x8xf32> to vector<16x8xf32>
    %77 = arith.truncf %76 : vector<16x8xf32> to vector<16x8xbf16>
    %78 = vector.extract_strided_slice %21 {offsets = [8, 0], sizes = [8, 32], strides = [1, 1]} : vector<32x32xbf16> to vector<8x32xbf16>
    %cst_25 = arith.constant dense<0.000000e+00> : vector<16x32xf32>
    %79 = tpu.matmul %77, %78, %cst_25 {dimension_numbers = #tpu.dot_dimension_numbers<[1], [0], [0], [1], [0, 0, 1, 1], [], []>} : vector<16x8xbf16>, vector<8x32xbf16>, vector<16x32xf32> -> vector<16x32xf32>
    %80 = arith.addf %51, %79 : vector<16x32xf32>
    %81 = vector.extract_strided_slice %19 {offsets = [0, 16], sizes = [16, 8], strides = [1, 1]} : vector<16x96xf32> to vector<16x8xf32>
    %82 = vector.shape_cast %81 : vector<16x8xf32> to vector<2x8x8xf32>
    %cst_26 = arith.constant 0.353553385 : f32
    %83 = vector.broadcast %cst_26 : f32 to vector<2x8x8xf32>
    %84 = arith.mulf %82, %83 : vector<2x8x8xf32>
    %85 = vector.extract_strided_slice %19 {offsets = [0, 48], sizes = [16, 8], strides = [1, 1]} : vector<16x96xf32> to vector<16x8xf32>
    %86 = vector.shape_cast %85 : vector<16x8xf32> to vector<2x8x8xf32>
    %87 = vector.extract_strided_slice %19 {offsets = [0, 80], sizes = [16, 8], strides = [1, 1]} : vector<16x96xf32> to vector<16x8xf32>
    %88 = vector.shape_cast %87 : vector<16x8xf32> to vector<2x8x8xf32>
    %cst_27 = arith.constant dense<0.000000e+00> : vector<2x8x8xf32>
    %89 = tpu.matmul %84, %86, %cst_27 {dimension_numbers = #tpu.dot_dimension_numbers<[2], [2], [1], [1], [0, 0, 0, 1, 1, 1], [0], [0]>} : vector<2x8x8xf32>, vector<2x8x8xf32>, vector<2x8x8xf32> -> vector<2x8x8xf32>
    %cst_28 = arith.constant dense<0xFF800000> : vector<2x8xf32>
    %90 = vector.multi_reduction <maximumf>, %89, %cst_28 [2] : vector<2x8x8xf32> to vector<2x8xf32>
    %91 = vector.shape_cast %90 : vector<2x8xf32> to vector<2x8x1xf32>
    %92 = vector.broadcast %91 : vector<2x8x1xf32> to vector<2x8x8xf32>
    %93 = arith.subf %89, %92 : vector<2x8x8xf32>
    %94 = math.exp %93 : vector<2x8x8xf32>
    %cst_29 = arith.constant dense<0.000000e+00> : vector<2x8xf32>
    %95 = vector.multi_reduction <add>, %94, %cst_29 [2] : vector<2x8x8xf32> to vector<2x8xf32>
    %96 = vector.shape_cast %95 : vector<2x8xf32> to vector<2x8x1xf32>
    %97 = tpu.reciprocal %96 {approx = true} : vector<2x8x1xf32> -> vector<2x8x1xf32>
    %98 = arith.mulf %96, %97 : vector<2x8x1xf32>
    %cst_30 = arith.constant 2.000000e+00 : f32
    %99 = vector.broadcast %cst_30 : f32 to vector<2x8x1xf32>
    %100 = arith.subf %99, %98 : vector<2x8x1xf32>
    %101 = arith.mulf %97, %100 : vector<2x8x1xf32>
    %102 = vector.broadcast %101 : vector<2x8x1xf32> to vector<2x8x8xf32>
    %103 = arith.mulf %94, %102 : vector<2x8x8xf32>
    %cst_31 = arith.constant dense<0.000000e+00> : vector<2x8x8xf32>
    %104 = tpu.matmul %103, %88, %cst_31 {dimension_numbers = #tpu.dot_dimension_numbers<[2], [1], [1], [2], [0, 0, 0, 1, 1, 2], [0], [0]>} : vector<2x8x8xf32>, vector<2x8x8xf32>, vector<2x8x8xf32> -> vector<2x8x8xf32>
    %105 = vector.shape_cast %104 : vector<2x8x8xf32> to vector<16x8xf32>
    %106 = arith.truncf %105 : vector<16x8xf32> to vector<16x8xbf16>
    %107 = vector.extract_strided_slice %21 {offsets = [16, 0], sizes = [8, 32], strides = [1, 1]} : vector<32x32xbf16> to vector<8x32xbf16>
    %cst_32 = arith.constant dense<0.000000e+00> : vector<16x32xf32>
    %108 = tpu.matmul %106, %107, %cst_32 {dimension_numbers = #tpu.dot_dimension_numbers<[1], [0], [0], [1], [0, 0, 1, 1], [], []>} : vector<16x8xbf16>, vector<8x32xbf16>, vector<16x32xf32> -> vector<16x32xf32>
    %109 = arith.addf %80, %108 : vector<16x32xf32>
    %110 = vector.extract_strided_slice %19 {offsets = [0, 24], sizes = [16, 8], strides = [1, 1]} : vector<16x96xf32> to vector<16x8xf32>
    %111 = vector.shape_cast %110 : vector<16x8xf32> to vector<2x8x8xf32>
    %cst_33 = arith.constant 0.353553385 : f32
    %112 = vector.broadcast %cst_33 : f32 to vector<2x8x8xf32>
    %113 = arith.mulf %111, %112 : vector<2x8x8xf32>
    %114 = vector.extract_strided_slice %19 {offsets = [0, 56], sizes = [16, 8], strides = [1, 1]} : vector<16x96xf32> to vector<16x8xf32>
    %115 = vector.shape_cast %114 : vector<16x8xf32> to vector<2x8x8xf32>
    %116 = vector.extract_strided_slice %19 {offsets = [0, 88], sizes = [16, 8], strides = [1, 1]} : vector<16x96xf32> to vector<16x8xf32>
    %117 = vector.shape_cast %116 : vector<16x8xf32> to vector<2x8x8xf32>
    %cst_34 = arith.constant dense<0.000000e+00> : vector<2x8x8xf32>
    %118 = tpu.matmul %113, %115, %cst_34 {dimension_numbers = #tpu.dot_dimension_numbers<[2], [2], [1], [1], [0, 0, 0, 1, 1, 1], [0], [0]>} : vector<2x8x8xf32>, vector<2x8x8xf32>, vector<2x8x8xf32> -> vector<2x8x8xf32>
    %cst_35 = arith.constant dense<0xFF800000> : vector<2x8xf32>
    %119 = vector.multi_reduction <maximumf>, %118, %cst_35 [2] : vector<2x8x8xf32> to vector<2x8xf32>
    %120 = vector.shape_cast %119 : vector<2x8xf32> to vector<2x8x1xf32>
    %121 = vector.broadcast %120 : vector<2x8x1xf32> to vector<2x8x8xf32>
    %122 = arith.subf %118, %121 : vector<2x8x8xf32>
    %123 = math.exp %122 : vector<2x8x8xf32>
    %cst_36 = arith.constant dense<0.000000e+00> : vector<2x8xf32>
    %124 = vector.multi_reduction <add>, %123, %cst_36 [2] : vector<2x8x8xf32> to vector<2x8xf32>
    %125 = vector.shape_cast %124 : vector<2x8xf32> to vector<2x8x1xf32>
    %126 = tpu.reciprocal %125 {approx = true} : vector<2x8x1xf32> -> vector<2x8x1xf32>
    %127 = arith.mulf %125, %126 : vector<2x8x1xf32>
    %cst_37 = arith.constant 2.000000e+00 : f32
    %128 = vector.broadcast %cst_37 : f32 to vector<2x8x1xf32>
    %129 = arith.subf %128, %127 : vector<2x8x1xf32>
    %130 = arith.mulf %126, %129 : vector<2x8x1xf32>
    %131 = vector.broadcast %130 : vector<2x8x1xf32> to vector<2x8x8xf32>
    %132 = arith.mulf %123, %131 : vector<2x8x8xf32>
    %cst_38 = arith.constant dense<0.000000e+00> : vector<2x8x8xf32>
    %133 = tpu.matmul %132, %117, %cst_38 {dimension_numbers = #tpu.dot_dimension_numbers<[2], [1], [1], [2], [0, 0, 0, 1, 1, 2], [0], [0]>} : vector<2x8x8xf32>, vector<2x8x8xf32>, vector<2x8x8xf32> -> vector<2x8x8xf32>
    %134 = vector.shape_cast %133 : vector<2x8x8xf32> to vector<16x8xf32>
    %135 = arith.truncf %134 : vector<16x8xf32> to vector<16x8xbf16>
    %136 = vector.extract_strided_slice %21 {offsets = [24, 0], sizes = [8, 32], strides = [1, 1]} : vector<32x32xbf16> to vector<8x32xbf16>
    %cst_39 = arith.constant dense<0.000000e+00> : vector<16x32xf32>
    %137 = tpu.matmul %135, %136, %cst_39 {dimension_numbers = #tpu.dot_dimension_numbers<[1], [0], [0], [1], [0, 0, 1, 1], [], []>} : vector<16x8xbf16>, vector<8x32xbf16>, vector<16x32xf32> -> vector<16x32xf32>
    %138 = arith.addf %109, %137 : vector<16x32xf32>
    %139 = vector.broadcast %7 : vector<1x32xf32> to vector<16x32xf32>
    %140 = arith.addf %138, %139 : vector<16x32xf32>
    %141 = arith.addf %3, %140 : vector<16x32xf32>
    %cst_40 = arith.constant dense<0.000000e+00> : vector<16xf32>
    %142 = vector.multi_reduction <add>, %141, %cst_40 [1] : vector<16x32xf32> to vector<16xf32>
    %143 = vector.shape_cast %142 : vector<16xf32> to vector<16x1xf32>
    %cst_41 = arith.constant 3.200000e+01 : f32
    %144 = vector.broadcast %cst_41 : f32 to vector<16x1xf32>
    %145 = arith.divf %143, %144 : vector<16x1xf32>
    %146 = vector.broadcast %145 : vector<16x1xf32> to vector<16x32xf32>
    %147 = arith.subf %141, %146 : vector<16x32xf32>
    %148 = arith.mulf %147, %147 : vector<16x32xf32>
    %cst_42 = arith.constant dense<0.000000e+00> : vector<16xf32>
    %149 = vector.multi_reduction <add>, %148, %cst_42 [1] : vector<16x32xf32> to vector<16xf32>
    %150 = vector.shape_cast %149 : vector<16xf32> to vector<16x1xf32>
    %cst_43 = arith.constant 3.200000e+01 : f32
    %151 = vector.broadcast %cst_43 : f32 to vector<16x1xf32>
    %152 = arith.divf %150, %151 : vector<16x1xf32>
    %cst_44 = arith.constant 9.99999974E-6 : f32
    %153 = vector.broadcast %cst_44 : f32 to vector<16x1xf32>
    %154 = arith.addf %152, %153 : vector<16x1xf32>
    %155 = math.rsqrt %154 : vector<16x1xf32>
    %156 = vector.broadcast %155 : vector<16x1xf32> to vector<16x32xf32>
    %157 = arith.mulf %147, %156 : vector<16x32xf32>
    %158 = vector.broadcast %8 : vector<1x32xf32> to vector<16x32xf32>
    %159 = arith.mulf %157, %158 : vector<16x32xf32>
    %160 = vector.broadcast %9 : vector<1x32xf32> to vector<16x32xf32>
    %161 = arith.addf %159, %160 : vector<16x32xf32>
    %162 = arith.truncf %161 : vector<16x32xf32> to vector<16x32xbf16>
    %c0_45 = arith.constant 0 : index
    %c0_46 = arith.constant 0 : index
    %c0_47 = arith.constant 0 : index
    %163 = vector.load %arg5[%c0_45, %c0_46, %c0_47] : memref<1x32x128xbf16, #tpu.memory_space<vmem>>, vector<1x32x128xbf16>
    %164 = vector.shape_cast %163 : vector<1x32x128xbf16> to vector<32x128xbf16>
    %cst_48 = arith.constant dense<0.000000e+00> : vector<16x128xf32>
    %165 = tpu.matmul %162, %164, %cst_48 {dimension_numbers = #tpu.dot_dimension_numbers<[1], [0], [0], [1], [0, 0, 1, 1], [], []>} : vector<16x32xbf16>, vector<32x128xbf16>, vector<16x128xf32> -> vector<16x128xf32>
    %166 = vector.broadcast %10 : vector<1x128xf32> to vector<16x128xf32>
    %167 = arith.addf %165, %166 : vector<16x128xf32>
    %168 = arith.negf %167 : vector<16x128xf32>
    %169 = math.exp %168 : vector<16x128xf32>
    %cst_49 = arith.constant 1.000000e+00 : f32
    %170 = vector.broadcast %cst_49 : f32 to vector<16x128xf32>
    %171 = arith.addf %170, %169 : vector<16x128xf32>
    %172 = arith.divf %170, %171 : vector<16x128xf32>
    %173 = arith.mulf %167, %172 : vector<16x128xf32>
    %174 = arith.truncf %173 : vector<16x128xf32> to vector<16x128xbf16>
    %c0_50 = arith.constant 0 : index
    %c0_51 = arith.constant 0 : index
    %c0_52 = arith.constant 0 : index
    %175 = vector.load %arg6[%c0_50, %c0_51, %c0_52] : memref<1x128x32xbf16, #tpu.memory_space<vmem>>, vector<1x128x32xbf16>
    %176 = vector.shape_cast %175 : vector<1x128x32xbf16> to vector<128x32xbf16>
    %cst_53 = arith.constant dense<0.000000e+00> : vector<16x32xf32>
    %177 = tpu.matmul %174, %176, %cst_53 {dimension_numbers = #tpu.dot_dimension_numbers<[1], [0], [0], [1], [0, 0, 1, 1], [], []>} : vector<16x128xbf16>, vector<128x32xbf16>, vector<16x32xf32> -> vector<16x32xf32>
    %178 = vector.broadcast %11 : vector<1x32xf32> to vector<16x32xf32>
    %179 = arith.addf %177, %178 : vector<16x32xf32>
    %180 = arith.addf %161, %179 : vector<16x32xf32>
    %cst_54 = arith.constant dense<0.000000e+00> : vector<16xf32>
    %181 = vector.multi_reduction <add>, %180, %cst_54 [1] : vector<16x32xf32> to vector<16xf32>
    %182 = vector.shape_cast %181 : vector<16xf32> to vector<16x1xf32>
    %cst_55 = arith.constant 3.200000e+01 : f32
    %183 = vector.broadcast %cst_55 : f32 to vector<16x1xf32>
    %184 = arith.divf %182, %183 : vector<16x1xf32>
    %185 = vector.broadcast %184 : vector<16x1xf32> to vector<16x32xf32>
    %186 = arith.subf %180, %185 : vector<16x32xf32>
    %187 = arith.mulf %186, %186 : vector<16x32xf32>
    %cst_56 = arith.constant dense<0.000000e+00> : vector<16xf32>
    %188 = vector.multi_reduction <add>, %187, %cst_56 [1] : vector<16x32xf32> to vector<16xf32>
    %189 = vector.shape_cast %188 : vector<16xf32> to vector<16x1xf32>
    %cst_57 = arith.constant 3.200000e+01 : f32
    %190 = vector.broadcast %cst_57 : f32 to vector<16x1xf32>
    %191 = arith.divf %189, %190 : vector<16x1xf32>
    %cst_58 = arith.constant 9.99999974E-6 : f32
    %192 = vector.broadcast %cst_58 : f32 to vector<16x1xf32>
    %193 = arith.addf %191, %192 : vector<16x1xf32>
    %194 = math.rsqrt %193 : vector<16x1xf32>
    %195 = vector.broadcast %194 : vector<16x1xf32> to vector<16x32xf32>
    %196 = arith.mulf %186, %195 : vector<16x32xf32>
    %197 = vector.broadcast %12 : vector<1x32xf32> to vector<16x32xf32>
    %198 = arith.mulf %196, %197 : vector<16x32xf32>
    %199 = vector.broadcast %13 : vector<1x32xf32> to vector<16x32xf32>
    %200 = arith.addf %198, %199 : vector<16x32xf32>
    %c0_59 = arith.constant 0 : index
    %c0_60 = arith.constant 0 : index
    %201 = vector.load %arg9[%c0_59, %c0_60] : memref<16x32xf32, #tpu.memory_space<vmem>>, vector<16x32xf32>
    tpu.vector_store %arg9[%c0_59, %c0_60], %200 {strides = array<i32>} : memref<16x32xf32, #tpu.memory_space<vmem>>, vector<16x32xf32>,
    %c1_i32 = arith.constant 1 : i32
    %202 = arith.cmpi eq, %arg1, %c1_i32 : i32
    %203 = arith.extui %202 : i1 to i32
    %c0_i32_61 = arith.constant 0 : i32
    %204 = arith.cmpi ne, %203, %c0_i32_61 : i32
    scf.if %204 {
      %205 = vector.shape_cast %200 : vector<16x32xf32> to vector<2x8x32xf32>
      %c0_62 = arith.constant 0 : index
      %c0_63 = arith.constant 0 : index
      %c0_64 = arith.constant 0 : index
      %206 = vector.load %arg8[%c0_62, %c0_63, %c0_64] : memref<2x8x32xf32, #tpu.memory_space<vmem>>, vector<2x8x32xf32>
      tpu.vector_store %arg8[%c0_62, %c0_63, %c0_64], %205 {strides = array<i32>} : memref<2x8x32xf32, #tpu.memory_space<vmem>>, vector<2x8x32xf32>,
    } else {
    }
    return
  }
  func.func @transform_0(%arg0: i32, %arg1: i32) -> (i32, i32, i32) {
    %c0_i32 = arith.constant 0 : i32
    %c0_i32_0 = arith.constant 0 : i32
    %c0_i32_1 = arith.constant 0 : i32
    return %arg0, %c0_i32, %c0_i32_0 : i32, i32, i32
  }
  func.func @transform_1(%arg0: i32, %arg1: i32) -> (i32, i32, i32) {
    %c0_i32 = arith.constant 0 : i32
    %c0_i32_0 = arith.constant 0 : i32
    %c0_i32_1 = arith.constant 0 : i32
    return %arg1, %c0_i32, %c0_i32_0 : i32, i32, i32
  }
  func.func @transform_2(%arg0: i32, %arg1: i32) -> (i32, i32, i32) {
    %c0_i32 = arith.constant 0 : i32
    %c0_i32_0 = arith.constant 0 : i32
    %c0_i32_1 = arith.constant 0 : i32
    return %arg1, %c0_i32, %c0_i32_0 : i32, i32, i32
  }
  func.func @transform_3(%arg0: i32, %arg1: i32) -> (i32, i32, i32) {
    %c0_i32 = arith.constant 0 : i32
    %c0_i32_0 = arith.constant 0 : i32
    %c0_i32_1 = arith.constant 0 : i32
    return %arg1, %c0_i32, %c0_i32_0 : i32, i32, i32
  }
  func.func @transform_4(%arg0: i32, %arg1: i32) -> (i32, i32, i32) {
    %c0_i32 = arith.constant 0 : i32
    %c0_i32_0 = arith.constant 0 : i32
    %c0_i32_1 = arith.constant 0 : i32
    return %arg1, %c0_i32, %c0_i32_0 : i32, i32, i32
  }
  func.func @transform_5(%arg0: i32, %arg1: i32) -> (i32, i32, i32) {
    %c0_i32 = arith.constant 0 : i32
    %c0_i32_0 = arith.constant 0 : i32
    %c0_i32_1 = arith.constant 0 : i32
    return %arg1, %c0_i32, %c0_i32_0 : i32, i32, i32
  }
  func.func @transform_6(%arg0: i32, %arg1: i32) -> (i32, i32, i32) {
    %c0_i32 = arith.constant 0 : i32
    %c0_i32_0 = arith.constant 0 : i32
    %c0_i32_1 = arith.constant 0 : i32
    return %arg0, %c0_i32, %c0_i32_0 : i32, i32, i32
  }
}

</mosaic_0001>

<bundles_post_ra>
// kernel: tpu_custom_call.1
= control target key start
LH: loop header
LB: loop body
LE: loop exit
PB: predicated region body
PF: predicated region fallthrough
CT: control target
= control target key end

     0   :  { %11 = vsyncpa [#allocation4], 0  ;;  %s2865_s21 = smov 0   ;;  %s2867_s22 = smov 0   ;;  %s3193_s0 = inlined_call_operand.vmem [shape: f32[2,8,32], index: 0, kind: input, shape index: {}]   ;;  %s3194_s1 = inlined_call_operand.vmem [shape: bf16[2,32,96], index: 1, kind: input, shape index: {}]   ;;  %s3195_s2 = inlined_call_operand.vmem [shape: bf16[2,32,32], index: 2, kind: input, shape index: {}]   ;;  %s3196_s3 = inlined_call_operand.vmem [shape: bf16[2,32,128], index: 3, kind: input, shape index: {}]   ;;  %s3197_s4 = inlined_call_operand.vmem [shape: bf16[2,128,32], index: 4, kind: input, shape index: {}]   ;;  %s3198_s5 = inlined_call_operand.vmem [shape: f32[2,8,128], index: 5, kind: input, shape index: {}]   ;;  %s3199_s6 = inlined_call_operand.hbm [shape: f32[2,8,32], index: 6, kind: output, shape index: {}]  }
   0x1   :  { %s2869_s23 = smov 0  }
   0x2 LB: > { %s2391_s24 = sadd.s32 4294967295, %s2812_s23   ;;  %s26_s25 = sadd.s32 1, %s2808_s22  ;;  %s2812_s23 = sphi %s2869_s23, %s17_s23   ;;  %s2808_s22 = sphi %s2867_s22, %s3202_s22   ;;  %s2804_s21 = sphi %s2865_s21, %s3201_s21  }
   0x3   : > { %p27_p0 = scmp.ge.s32.totalorder %s26_s25, 2  ;;  %p2395_p1 = scmp.ge.s32.totalorder %s2812_s23, 1 }
   0x4   : > { %p275_p2 = scmp.lt.s32.totalorder %s2812_s23, 3 }
   0x5   : > { %s3204_s25 = smov (%p27_p0, %s26_s25), 0 }
   0x6   : > { %p276_p3 = pnand %p2395_p1, %p275_p2 }
   0x7   : > { %p330_p4 = scmp.lt.s32.totalorder (!%p276_p3), %s2804_s21, 1  ;;  %p2405_p5 = scmp.ne.s32.totalorder (!%p276_p3), %s2804_s21, 0 }
   0x8   : > { %279 = sbr.rel (%p276_p3) target bundleno = 4295 (0x10c7), region = 44 }
   0xf   : > { %s331_s26 = scalar_select %p330_p4, %s2804_s21, 1 }
  0x10   : > { %359 = sbr.rel (%p2405_p5) target bundleno = 23 (0x17), region = 48  ;;  %v360_v0 = vld [vmem:[%s3193_s0] sm:$0xff] (!%p2405_p5)  ;;  %vm362_vm0 = vcmask (!%p2405_p5), 261120   ;;  %v361_v1 = vld [vmem:[%s3193_s0 + $0x8] sm:$0xff] (!%p2405_p5) }
  0x11   : > { %s2455_s27 = sshll.u32 %s331_s26, 4  ;;  %s2458_s28 = sshll.u32 %s331_s26, 6  ;;  %363 = vst.msk [vmem:[#allocation2] sm:$0xff] (!%p2405_p5), %vm362_vm0, %v360_v0  ;;  %364 = vst.msk [vmem:[#allocation2 + $0x8] sm:$0xff] (!%p2405_p5), %vm362_vm0, %v361_v1 }
  0x12   : > { %s334_s7 = scalar_lea.vmem %s3194_s1, %s2455_s27  ;;  %s2894_s10 = scalar_lea.vmem %s3195_s2, %s2455_s27 }
  0x13   : > { %s2899_s13 = scalar_lea.vmem %s3196_s3, %s2455_s27  ;;  %s2904_s16 = scalar_lea.vmem %s3197_s4, %s2458_s28 }
  0x14   : > { %s2404_s17 = sshll.u32 %s331_s26, 3 }
  0x15   : > { %s353_s20 = scalar_lea.vmem %s3198_s5, %s2404_s17 }
  0x17 PF: > { %v2700_v2 = vld [vmem:[%s334_s7] sm:$0xff]   ;;  %v2814_v3 = vmov 0.0   ;;  %v2701_v4 = vld [vmem:[%s334_s7 + $0x8] sm:$0xff]   ;;  %vm2815_vm1 = vmmov 0   ;;  %vm389_vm2 = vcmask 261120   ;;  %v373_v8 = vlaneseq  ;;  %s2816_s26 = smov 96  }
  0x18   : > { %2514 = vmatprep.subr.bf16.mxu0 %v2814_v3  ;;  %2527 = vmatprep.subr.mxu1 %v2814_v3  ;;  %v2920_v5 = vld [vmem:[#allocation2] sm:$0xff]  ;;  %v2922_v6 = vld [vmem:[#allocation2 + $0x8] sm:$0xff]  ;;  %vm443_vm3 = vcmask 64512   ;;  %s2817_s28 = smov 64   ;;  %s2818_s7 = smov 88   ;;  %vm1118_vm4 = vcmask 1043456  }
  0x19   : > { %2515 = vmatpush3.bf16.msra.mxu0 %v2700_v2  ;;  %2518 = vmatprep.mubr.msk.bf16.mxu0 %vm2815_vm1, %v2814_v3  ;;  %v368_v7 = vpack.c.bf16 %v2922_v6, %v2920_v5  ;;  %v2933_v9 = vshrl.u32 %v373_v8, 7  ;;  %v2936_v11 = vld [vmem:[%s353_s20] sm:$0xff]  ;;  %s2819_s9 = smov 120   ;;  %s2820_s11 = smov 56  }
  0x1a   : > { %2516 = vmatprep.subr.bf16.mxu0 %v2814_v3  ;;  %2529 = vmatprep.mubr.msk.f32.mxu1 %vm2815_vm1, %v2814_v3  ;;  %s2821_s12 = smov 80   ;;  %s2822_s14 = smov 112  }
  0x1b   : > { %v375_v10 = vsub.s32 0, %v2933_v9  ;;  %s2823_s15 = smov 48   ;;  %s2824_s17 = smov 104  }
  0x1c   : > { %s2825_s18 = smov 72   ;;  %s2826_s19 = smov 40  }
  0x1d   : > { %2517 = vmatpush3.bf16.msra.mxu0 %v2701_v4  ;;  %v376_v12 = vrot.slane %v2936_v11, %v375_v10  ;;  %p2450_p6 = scmp.ne.s32.totalorder %s2804_s21, 1 }
  0x1e   : > { %2522 = vmatprep.subr.mxu0 %v2814_v3 }
  0x20   : > { %2519 = vmatmul.mubr.msk.bf16.vlgmr.msra.gmra.mrb[0].mxu0 %vm389_vm2, %v368_v7 }
  0x21   : > { %2524 = vmatprep.mubr.msk.f32.mxu0 %vm2815_vm1, %v2814_v3 }
  0xf3   : > { %v427_v13 = vpop.f32.mrb[0].mxu0 }
  0xf4   : > { %v2939_v14 = vadd.f32 %v427_v13, %v376_v12  ;;  %v2520_v15 = vpop.f32.mrb[1].mxu0 }
  0xf5   : > { %v430_v16 = vpop.f32.mrb[2].mxu0 }
  0xf6   : > { %441 = vrot.lane.b32.xlu0 %v2939_v14, %s2816_s26  ;;  %v2521_v17 = vpop.f32.mrb[3].mxu0  ;;  %v2942_v18 = vadd.f32 %v430_v16, %v376_v12  ;;  %v2947_v20 = vmul.f32 0.35355338, %v2939_v14 }
  0xf8   : > { %v2956_v22 = vmul.f32 0.35355338, %v2942_v18 }
  0xfa   : > { %520 = vrot.lane.b32.xlu0 %v2942_v18, %s2816_s26 }
 0x168   : > { %v442_v19 = vpop.permute.xlu0 %441 }
 0x169   : > { %2523 = vmatpush3.xpose.msk.msra.mxu0 %vm443_vm3, %v442_v19 }
 0x16a   : > { %2537 = vmatprep.subr.mxu0 %v2814_v3 }
 0x16c   : > { %2525 = vmatmul.mubr.msk.f32.vlgmr.msra.gmra.mrb[4].mxu0 %vm443_vm3, %v2947_v20  ;;  %v521_v21 = vpop.permute.xlu0 %520 }
 0x16d   : > { %2528 = vmatpush3.xpose.msk.msra.mxu1 %vm443_vm3, %v521_v21  ;;  %2539 = vmatprep.mubr.msk.f32.mxu0 %vm2815_vm1, %v2814_v3 }
 0x16e   : > { %2532 = vmatprep.subr.mxu1 %v2814_v3 }
 0x170   : > { %2530 = vmatmul.mubr.msk.f32.vlgmr.msra.gmra.mrb[0].mxu1 %vm443_vm3, %v2956_v22 }
 0x171   : > { %2534 = vmatprep.mubr.msk.f32.mxu1 %vm2815_vm1, %v2814_v3 }
 0x23f   : > { %v515_v23 = vpop.f32.mrb[4].mxu0 }
 0x240   : > { %v2526_v24 = vpop.f32.mrb[5].mxu0  ;;  %v597_v25 = vsel %vm443_vm3, %v515_v23, -inf }
 0x241   : > { %598 = vmax.xlane.f32.xlu1 %v597_v25 }
 0x243   : > { %v593_v26 = vpop.f32.mrb[0].mxu1 }
 0x244   : > { %v2531_v27 = vpop.f32.mrb[1].mxu1  ;;  %v600_v28 = vsel %vm443_vm3, %v593_v26, -inf }
 0x245   : > { %601 = vmax.xlane.f32.xlu1 %v600_v28 }
 0x256   : > { %625 = vrot.lane.b32.xlu1 %v2939_v14, %s2817_s28 }
 0x25a   : > { %701 = vrot.lane.b32.xlu1 %v2942_v18, %s2817_s28 }
 0x25e   : > { %780 = vrot.lane.b32.xlu1 %v2939_v14, %s2818_s7 }
 0x2ce   : > { %v599_v29 = vpop.xlane.xlu1 %598 }
 0x2cf   : > { %v603_v30 = vsub.f32 %v515_v23, %v599_v29 }
 0x2d1   : > { %v605_v31 = vmul.f32 1.442695, %v603_v30 }
 0x2d2   : > { %v602_v32 = vpop.xlane.xlu1 %601 }
 0x2d3   : > { %2712 = vpow2.f32 %v605_v31  ;;  %v604_v33 = vsub.f32 %v593_v26, %v602_v32 }
 0x2d5   : > { %v607_v34 = vmul.f32 1.442695, %v604_v33 }
 0x2d6   : > { %v626_v35 = vpop.permute.xlu1 %625 }
 0x2d7   : > { %2714 = vpow2.f32 %v607_v34  ;;  %2533 = vmatpush3.msra.mxu1 %v626_v35 }
 0x2d8   : > { %2542 = vmatprep.subr.mxu1 %v2814_v3 }
 0x2da   : > { %v702_v36 = vpop.permute.xlu1 %701 }
 0x2db   : > { %2538 = vmatpush3.msra.mxu0 %v702_v36 }
 0x2dc   : > { %2547 = vmatprep.subr.mxu0 %v2814_v3 }
 0x2dd   : > { %v2713_v37 = vpop.eup %2712 }
 0x2de   : > { %v609_v38 = vsel %vm443_vm3, %v2713_v37, 0.0  ;;  %v781_v41 = vpop.permute.xlu1 %780 }
 0x2df   : > { %610 = vadd.xlane.f32.xlu0 %v609_v38 }
 0x2e1   : > { %v2715_v39 = vpop.eup %2714 }
 0x2e2   : > { %v612_v40 = vsel %vm443_vm3, %v2715_v39, 0.0 }
 0x2e3   : > { %613 = vadd.xlane.f32.xlu1 %v612_v40 }
 0x2f4   : > { %858 = vrot.lane.b32.xlu1 %v2942_v18, %s2818_s7 }
 0x2f5   : > { %778 = vrot.lane.b32.xlu0 %v2947_v20, %s2819_s9 }
 0x2f8   : > { %856 = vrot.lane.b32.xlu1 %v2956_v22, %s2819_s9 }
 0x36c   : > { %v611_v42 = vpop.xlane.xlu0 %610 }
 0x36d   : > { %2716 = vrcp.f32 %v611_v42 }
 0x370   : > { %v614_v43 = vpop.xlane.xlu1 %613  ;;  %v779_v55 = vpop.permute.xlu0 %778 }
 0x371   : > { %2718 = vrcp.f32 %v614_v43 }
 0x374   : > { %v859_v53 = vpop.permute.xlu1 %858 }
 0x377   : > { %v2717_v44 = vpop.eup %2716 }
 0x378   : > { %v617_v45 = vmul.f32 %v2717_v44, %v611_v42  ;;  %v857_v56 = vpop.permute.xlu1 %856 }
 0x37a   : > { %v619_v46 = vsub.f32 2.0, %v617_v45  ;;  %v434_v45 = vld [vmem:[%s2894_s10] sm:$0xf] }
 0x37b   : > { %v2719_v47 = vpop.eup %2718 }
 0x37c   : > { %v621_v48 = vmul.f32 %v2717_v44, %v619_v46  ;;  %v618_v49 = vmul.f32 %v2719_v47, %v614_v43 }
 0x37e   : > { %v623_v50 = vmul.f32 %v2713_v37, %v621_v48  ;;  %v620_v51 = vsub.f32 2.0, %v618_v49 }
 0x380   : > { %v622_v52 = vmul.f32 %v2719_v47, %v620_v51  ;;  %2535 = vmatmul.mubr.msk.f32.vlgmr.msra.gmra.mrb[2].mxu1 %vm443_vm3, %v623_v50  ;;  %v1167_v51 = vsel %vm1118_vm4, %v434_v45, 0  ;;  %v436_v45 = vld [vmem:[%s2894_s10 + $0x8] sm:$0xf] }
 0x381   : > { %2543 = vmatpush3.xpose.msk.msra.mxu1 %vm443_vm3, %v781_v41  ;;  %2544 = vmatprep.mubr.msk.f32.mxu1 %vm2815_vm1, %v2814_v3  ;;  %v435_v41 = vld [vmem:[%s2894_s10 + $0x4] sm:$0xf] }
 0x382   : > { %v624_v54 = vmul.f32 %v2715_v39, %v622_v52  ;;  %2552 = vmatprep.subr.mxu1 %v2814_v3  ;;  %v1120_v42 = vsel %vm1118_vm4, %v435_v41, 0 }
 0x384   : > { %2540 = vmatmul.mubr.msk.f32.vlgmr.msra.gmra.mrb[6].mxu0 %vm443_vm3, %v624_v54  ;;  %2545 = vmatmul.mubr.msk.f32.vlgmr.msra.gmra.mrb[4].mxu1 %vm443_vm3, %v779_v55 }
 0x385   : > { %2548 = vmatpush3.xpose.msk.msra.mxu0 %vm443_vm3, %v859_v53  ;;  %2549 = vmatprep.mubr.msk.f32.mxu0 %vm2815_vm1, %v2814_v3 }
 0x386   : > { %2557 = vmatprep.subr.mxu0 %v2814_v3  ;;  %2554 = vmatprep.mubr.msk.f32.mxu1 %vm2815_vm1, %v2814_v3 }
 0x388   : > { %2550 = vmatmul.mubr.msk.f32.vlgmr.msra.gmra.mrb[8].mxu0 %vm443_vm3, %v857_v56 }
 0x389   : > { %2559 = vmatprep.mubr.msk.f32.mxu0 %vm2815_vm1, %v2814_v3 }
 0x453   : > { %v2991_v57 = vpop.f32.mrb[2].mxu1 }
 0x454   : > { %v2536_v58 = vpop.f32.mrb[3].mxu1 }
 0x457   : > { %v2993_v59 = vpop.f32.mrb[6].mxu0  ;;  %v852_v60 = vpop.f32.mrb[4].mxu1 }
 0x458   : > { %v777_v61 = vpack.c.bf16 %v2993_v59, %v2991_v57  ;;  %v2541_v62 = vpop.f32.mrb[7].mxu0  ;;  %v2546_v63 = vpop.f32.mrb[5].mxu1  ;;  %v934_v0 = vsel %vm443_vm3, %v852_v60, -inf }
 0x459   : > { %935 = vmax.xlane.f32.xlu1 %v934_v0 }
 0x45b   : > { %v930_v1 = vpop.f32.mrb[8].mxu0 }
 0x45c   : > { %v2551_v2 = vpop.f32.mrb[9].mxu0  ;;  %v937_v4 = vsel %vm443_vm3, %v930_v1, -inf }
 0x45d   : > { %938 = vmax.xlane.f32.xlu0 %v937_v4 }
 0x473   : > { %1038 = vrot.lane.b32.xlu0 %v2942_v18, %s2820_s11 }
 0x477   : > { %1212 = vrot.lane.b32.xlu0 %v2939_v14, %s2821_s12 }
 0x4e6   : > { %v936_v7 = vpop.xlane.xlu1 %935 }
 0x4e7   : > { %v940_v8 = vsub.f32 %v852_v60, %v936_v7 }
 0x4e9   : > { %v942_v10 = vmul.f32 1.442695, %v940_v8 }
 0x4ea   : > { %v939_v12 = vpop.xlane.xlu0 %938 }
 0x4eb   : > { %2720 = vpow2.f32 %v942_v10  ;;  %v941_v13 = vsub.f32 %v930_v1, %v939_v12 }
 0x4ed   : > { %v944_v15 = vmul.f32 1.442695, %v941_v13 }
 0x4ee   : > { %v1039_v16 = vpop.permute.xlu0 %1038 }
 0x4ef   : > { %2722 = vpow2.f32 %v944_v15  ;;  %2558 = vmatpush3.msra.mxu0 %v1039_v16 }
 0x4f0   : > { %2562 = vmatprep.subr.bf16.mxu0 %v2814_v3 }
 0x4f2   : > { %v1213_v37 = vpop.permute.xlu0 %1212 }
 0x4f5   : > { %v2721_v17 = vpop.eup %2720 }
 0x4f6   : > { %v946_v19 = vsel %vm443_vm3, %v2721_v17, 0.0 }
 0x4f7   : > { %947 = vadd.xlane.f32.xlu1 %v946_v19 }
 0x4f9   : > { %v2723_v21 = vpop.eup %2722 }
 0x4fa   : > { %v949_v23 = vsel %vm443_vm3, %v2723_v21, 0.0 }
 0x4fb   : > { %950 = vadd.xlane.f32.xlu1 %v949_v23 }
 0x50c   : > { %962 = vrot.lane.b32.xlu1 %v2939_v14, %s2820_s11 }
 0x510   : > { %1290 = vrot.lane.b32.xlu1 %v2942_v18, %s2821_s12 }
 0x514   : > { %1288 = vrot.lane.b32.xlu1 %v2956_v22, %s2822_s14 }
 0x518   : > { %1210 = vrot.lane.b32.xlu1 %v2947_v20, %s2822_s14 }
 0x584   : > { %v948_v24 = vpop.xlane.xlu1 %947 }
 0x585   : > { %2724 = vrcp.f32 %v948_v24 }
 0x588   : > { %v951_v25 = vpop.xlane.xlu1 %950 }
 0x589   : > { %2726 = vrcp.f32 %v951_v25 }
 0x58c   : > { %v963_v26 = vpop.permute.xlu1 %962 }
 0x58d   : > { %2553 = vmatpush3.msra.mxu1 %v963_v26 }
 0x58e   : > { %2574 = vmatprep.subr.mxu1 %v2814_v3 }
 0x58f   : > { %v2725_v27 = vpop.eup %2724 }
 0x590   : > { %v954_v28 = vmul.f32 %v2725_v27, %v948_v24  ;;  %v1291_v29 = vpop.permute.xlu1 %1290 }
 0x592   : > { %v956_v30 = vsub.f32 2.0, %v954_v28 }
 0x593   : > { %v2727_v31 = vpop.eup %2726 }
 0x594   : > { %v958_v32 = vmul.f32 %v2725_v27, %v956_v30  ;;  %v955_v33 = vmul.f32 %v2727_v31, %v951_v25  ;;  %v1289_v34 = vpop.permute.xlu1 %1288 }
 0x596   : > { %v960_v35 = vmul.f32 %v2721_v17, %v958_v32  ;;  %v957_v36 = vsub.f32 2.0, %v955_v33 }
 0x598   : > { %v959_v38 = vmul.f32 %v2727_v31, %v957_v36  ;;  %2555 = vmatmul.mubr.msk.f32.vlgmr.msra.gmra.mrb[6].mxu1 %vm443_vm3, %v960_v35  ;;  %v1211_v40 = vpop.permute.xlu1 %1210 }
 0x599   : > { %2575 = vmatpush3.xpose.msk.msra.mxu1 %vm443_vm3, %v1213_v37  ;;  %2576 = vmatprep.mubr.msk.f32.mxu1 %vm2815_vm1, %v2814_v3 }
 0x59a   : > { %v961_v39 = vmul.f32 %v2723_v21, %v959_v38  ;;  %2584 = vmatprep.subr.mxu1 %v2814_v3 }
 0x59c   : > { %2560 = vmatmul.mubr.msk.f32.vlgmr.msra.gmra.mrb[10].mxu0 %vm443_vm3, %v961_v39  ;;  %2577 = vmatmul.mubr.msk.f32.vlgmr.msra.gmra.mrb[8].mxu1 %vm443_vm3, %v1211_v40 }
 0x59d   : > { %2564 = vmatprep.mubr.msk.bf16.mxu0 %vm2815_vm1, %v2814_v3  ;;  %2586 = vmatprep.mubr.msk.f32.mxu1 %vm2815_vm1, %v2814_v3 }
 0x59e   : > { %2563 = vmatpush3.bf16.msra.mxu0 %v1120_v42 }
 0x59f   : > { %2568 = vmatprep.subr.bf16.mxu0 %v2814_v3 }
 0x66b   : > { %v1034_v43 = vpop.f32.mrb[6].mxu1 }
 0x66c   : > { %v2556_v44 = vpop.f32.mrb[7].mxu1 }
 0x66f   : > { %v1110_v46 = vpop.f32.mrb[10].mxu0  ;;  %v3024_v47 = vpop.f32.mrb[8].mxu1 }
 0x670   : > { %v1114_v48 = vpack.c.bf16 %v1110_v46, %v1034_v43  ;;  %v2561_v49 = vpop.f32.mrb[11].mxu0  ;;  %v2578_v50 = vpop.f32.mrb[9].mxu1  ;;  %v1551_v46 = vsel %vm1118_vm4, %v436_v45, 0 }
 0x672   : > { %2565 = vmatmul.mubr.msk.bf16.vlgmr.msra.gmra.mrb[12].mxu0 %vm443_vm3, %v1114_v48 }
 0x673   : > { %2569 = vmatpush3.bf16.msra.mxu0 %v1167_v51  ;;  %2570 = vmatprep.mubr.msk.bf16.mxu0 %vm2815_vm1, %v2814_v3 }
 0x674   : > { %2579 = vmatprep.subr.mxu0 %v2814_v3 }
 0x67a   : > { %2571 = vmatmul.mubr.msk.bf16.vlgmr.msra.gmra.mrb[16].mxu0 %vm443_vm3, %v777_v61 }
 0x67b   : > { %2581 = vmatprep.mubr.msk.f32.mxu0 %vm2815_vm1, %v2814_v3 }
 0x67c   : > { %2580 = vmatpush3.xpose.msk.msra.mxu0 %vm443_vm3, %v1291_v29 }
 0x67d   : > { %2589 = vmatprep.subr.mxu0 %v2814_v3 }
 0x682   : > { %2582 = vmatmul.mubr.msk.f32.vlgmr.msra.gmra.mrb[20].mxu0 %vm443_vm3, %v1289_v34 }
 0x683   : > { %2591 = vmatprep.mubr.msk.f32.mxu0 %vm2815_vm1, %v2814_v3 }
 0x745   : > { %v1156_v52 = vpop.f32.mrb[12].mxu0 }
 0x746   : > { %v2566_v53 = vpop.f32.mrb[13].mxu0 }
 0x747   : > { %v1159_v54 = vpop.f32.mrb[14].mxu0 }
 0x748   : > { %v2567_v55 = vpop.f32.mrb[15].mxu0 }
 0x74d   : > { %v1203_v56 = vpop.f32.mrb[16].mxu0 }
 0x74e   : > { %v3042_v57 = vadd.f32 %v1203_v56, %v1156_v52  ;;  %v2572_v58 = vpop.f32.mrb[17].mxu0 }
 0x74f   : > { %v1206_v59 = vpop.f32.mrb[18].mxu0 }
 0x750   : > { %v3044_v60 = vadd.f32 %v1206_v59, %v1159_v54  ;;  %v2573_v61 = vpop.f32.mrb[19].mxu0 }
 0x755   : > { %v1362_v62 = vpop.f32.mrb[20].mxu0 }
 0x756   : > { %v2583_v63 = vpop.f32.mrb[21].mxu0  ;;  %v1369_v0 = vsel %vm443_vm3, %v1362_v62, -inf }
 0x757   : > { %1370 = vmax.xlane.f32.xlu0 %v1369_v0 }
 0x76d   : > { %1470 = vrot.lane.b32.xlu0 %v2942_v18, %s2823_s15 }
 0x771   : > { %1596 = vrot.lane.b32.xlu0 %v2947_v20, %s2824_s17  ;;  %v1366_v20 = vsel %vm443_vm3, %v3024_v47, -inf }
 0x775   : > { %1674 = vrot.lane.b32.xlu0 %v2956_v22, %s2824_s17 }
 0x7e4   : > { %v1371_v1 = vpop.xlane.xlu0 %1370 }
 0x7e5   : > { %v1373_v2 = vsub.f32 %v1362_v62, %v1371_v1 }
 0x7e7   : > { %v1376_v4 = vmul.f32 1.442695, %v1373_v2 }
 0x7e8   : > { %v1471_v7 = vpop.permute.xlu0 %1470 }
 0x7e9   : > { %2728 = vpow2.f32 %v1376_v4  ;;  %2590 = vmatpush3.msra.mxu0 %v1471_v7 }
 0x7ea   : > { %2600 = vmatprep.subr.mxu0 %v2814_v3 }
 0x7ec   : > { %v1597_v21 = vpop.permute.xlu0 %1596 }
 0x7f0   : > { %v1675_v24 = vpop.permute.xlu0 %1674 }
 0x7f3   : > { %v2729_v8 = vpop.eup %2728 }
 0x7f4   : > { %v1381_v10 = vsel %vm443_vm3, %v2729_v8, 0.0 }
 0x7f5   : > { %1382 = vadd.xlane.f32.xlu1 %v1381_v10 }
 0x806   : > { %1598 = vrot.lane.b32.xlu1 %v2939_v14, %s2825_s18 }
 0x80a   : > { %1676 = vrot.lane.b32.xlu1 %v2942_v18, %s2825_s18 }
 0x82e   : > { %1367 = vmax.xlane.f32.xlu1 %v1366_v20 }
 0x882   : > { %v1383_v22 = vpop.xlane.xlu1 %1382 }
 0x883   : > { %2730 = vrcp.f32 %v1383_v22 }
 0x886   : > { %v1599_v19 = vpop.permute.xlu1 %1598 }
 0x88a   : > { %v1677_v23 = vpop.permute.xlu1 %1676 }
 0x88d   : > { %v2731_v12 = vpop.eup %2730 }
 0x88e   : > { %v1387_v13 = vmul.f32 %v2731_v12, %v1383_v22 }
 0x890   : > { %v1389_v15 = vsub.f32 2.0, %v1387_v13  ;;  %v437_v13 = vld [vmem:[%s2894_s10 + $0xc] sm:$0xf] }
 0x892   : > { %v1391_v16 = vmul.f32 %v2731_v12, %v1389_v15  ;;  %v1937_v15 = vsel %vm1118_vm4, %v437_v13, 0  ;;  %v2707_v13 = vld [vmem:[%s2904_s16 + $0x18] sm:$0xff]  }
 0x894   : > { %v1393_v17 = vmul.f32 %v2729_v8, %v1391_v16 }
 0x896   : > { %2592 = vmatmul.mubr.msk.f32.vlgmr.msra.gmra.mrb[22].mxu0 %vm443_vm3, %v1393_v17 }
 0x897   : > { %2601 = vmatpush3.xpose.msk.msra.mxu0 %vm443_vm3, %v1599_v19  ;;  %2602 = vmatprep.mubr.msk.f32.mxu0 %vm2815_vm1, %v2814_v3 }
 0x898   : > { %2605 = vmatprep.subr.mxu0 %v2814_v3 }
 0x89a   : > { %2603 = vmatmul.mubr.msk.f32.vlgmr.msra.gmra.mrb[24].mxu0 %vm443_vm3, %v1597_v21 }
 0x89b   : > { %2606 = vmatpush3.xpose.msk.msra.mxu0 %vm443_vm3, %v1677_v23  ;;  %2607 = vmatprep.mubr.msk.f32.mxu0 %vm2815_vm1, %v2814_v3 }
 0x89c   : > { %2615 = vmatprep.subr.mxu0 %v2814_v3 }
 0x89e   : > { %2608 = vmatmul.mubr.msk.f32.vlgmr.msra.gmra.mrb[26].mxu0 %vm443_vm3, %v1675_v24 }
 0x89f   : > { %2617 = vmatprep.mubr.msk.f32.mxu0 %vm2815_vm1, %v2814_v3 }
 0x8bb   : > { %v1368_v25 = vpop.xlane.xlu1 %1367 }
 0x8bc   : > { %v1372_v26 = vsub.f32 %v3024_v47, %v1368_v25 }
 0x8be   : > { %v1374_v27 = vmul.f32 1.442695, %v1372_v26 }
 0x8c0   : > { %2732 = vpow2.f32 %v1374_v27 }
 0x8ca   : > { %v2733_v28 = vpop.eup %2732 }
 0x8cb   : > { %v1378_v29 = vsel %vm443_vm3, %v2733_v28, 0.0 }
 0x8cc   : > { %1379 = vadd.xlane.f32.xlu0 %v1378_v29 }
 0x8e2   : > { %1394 = vrot.lane.b32.xlu0 %v2939_v14, %s2823_s15 }
 0x8e6   : > { %1856 = vrot.lane.b32.xlu0 %v2942_v18, %s2826_s19 }
 0x959   : > { %v1380_v30 = vpop.xlane.xlu0 %1379 }
 0x95a   : > { %2734 = vrcp.f32 %v1380_v30 }
 0x95d   : > { %v1395_v31 = vpop.permute.xlu0 %1394 }
 0x95e   : > { %2585 = vmatpush3.msra.mxu1 %v1395_v31 }
 0x95f   : > { %2594 = vmatprep.subr.bf16.mxu1 %v2814_v3 }
 0x961   : > { %v1857_v32 = vpop.permute.xlu0 %1856 }
 0x962   : > { %2616 = vmatpush3.msra.mxu0 %v1857_v32 }
 0x963   : > { %2626 = vmatprep.subr.bf16.mxu0 %v2814_v3 }
 0x964   : > { %v2735_v33 = vpop.eup %2734 }
 0x965   : > { %v1386_v34 = vmul.f32 %v2735_v33, %v1380_v30  ;;  %v1984_v30 = vsub.s32 1, %v2933_v9 }
 0x967   : > { %v1388_v35 = vsub.f32 2.0, %v1386_v34  ;;  %v1985_v31 = vrot.slane %v2936_v11, %v1984_v30 }
 0x969   : > { %v1390_v36 = vmul.f32 %v2735_v33, %v1388_v35  ;;  %v1542_v37 = vpop.f32.mrb[22].mxu0 }
 0x96a   : > { %v2593_v38 = vpop.f32.mrb[23].mxu0 }
 0x96b   : > { %v1392_v39 = vmul.f32 %v2733_v28, %v1390_v36 }
 0x96d   : > { %2587 = vmatmul.mubr.msk.f32.vlgmr.msra.gmra.mrb[10].mxu1 %vm443_vm3, %v1392_v39  ;;  %v1670_v18 = vpop.f32.mrb[24].mxu0 }
 0x96e   : > { %v2604_v40 = vpop.f32.mrb[25].mxu0  ;;  %v1752_v41 = vsel %vm443_vm3, %v1670_v18, -inf  ;;  %2596 = vmatprep.mubr.msk.bf16.mxu1 %vm2815_vm1, %v2814_v3  ;;  %2595 = vmatpush3.bf16.msra.mxu1 %v1551_v46 }
 0x96f   : > { %1753 = vmax.xlane.f32.xlu1 %v1752_v41  ;;  %2610 = vmatprep.subr.mxu1 %v2814_v3 }
 0x971   : > { %v1748_v42 = vpop.f32.mrb[26].mxu0 }
 0x972   : > { %v2609_v43 = vpop.f32.mrb[27].mxu0  ;;  %v1755_v44 = vsel %vm443_vm3, %v1748_v42, -inf }
 0x973   : > { %1756 = vmax.xlane.f32.xlu1 %v1755_v44 }
 0x9fc   : > { %v1754_v47 = vpop.xlane.xlu1 %1753 }
 0x9fd   : > { %v1758_v48 = vsub.f32 %v1670_v18, %v1754_v47 }
 0x9ff   : > { %v1760_v49 = vmul.f32 1.442695, %v1758_v48 }
 0xa00   : > { %v1757_v50 = vpop.xlane.xlu1 %1756 }
 0xa01   : > { %2736 = vpow2.f32 %v1760_v49  ;;  %v1759_v51 = vsub.f32 %v1748_v42, %v1757_v50  ;;  %v2703_v50 = vld [vmem:[%s2899_s13 + $0x8] sm:$0xff]  }
 0xa03   : > { %v1762_v52 = vmul.f32 1.442695, %v1759_v51 }
 0xa05   : > { %2738 = vpow2.f32 %v1762_v52 }
 0xa0b   : > { %v2737_v53 = vpop.eup %2736 }
 0xa0c   : > { %v1764_v54 = vsel %vm443_vm3, %v2737_v53, 0.0 }
 0xa0d   : > { %1765 = vadd.xlane.f32.xlu1 %v1764_v54 }
 0xa0f   : > { %v2739_v55 = vpop.eup %2738 }
 0xa10   : > { %v1767_v56 = vsel %vm443_vm3, %v2739_v55, 0.0 }
 0xa11   : > { %1768 = vadd.xlane.f32.xlu1 %v1767_v56 }
 0xa22   : > { %1780 = vrot.lane.b32.xlu1 %v2939_v14, %s2826_s19 }
 0xa40   : > { %v1466_v58 = vpop.f32.mrb[10].mxu1 }
 0xa41   : > { %v1546_v59 = vpack.c.bf16 %v1542_v37, %v1466_v58  ;;  %v2588_v61 = vpop.f32.mrb[11].mxu1  ;;  %v2019_v58 = vsub.s32 2, %v2933_v9 }
 0xa43   : > { %2597 = vmatmul.mubr.msk.bf16.vlgmr.msra.gmra.mrb[12].mxu1 %vm443_vm3, %v1546_v59  ;;  %v2020_v61 = vrot.slane %v2936_v11, %v2019_v58 }
 0xa44   : > { %2612 = vmatprep.mubr.msk.f32.mxu1 %vm2815_vm1, %v2814_v3 }
 0xa9a   : > { %v1766_v62 = vpop.xlane.xlu1 %1765 }
 0xa9b   : > { %2740 = vrcp.f32 %v1766_v62 }
 0xa9e   : > { %v1769_v63 = vpop.xlane.xlu1 %1768 }
 0xa9f   : > { %2742 = vrcp.f32 %v1769_v63 }
 0xaa2   : > { %v1781_v0 = vpop.permute.xlu1 %1780 }
 0xaa3   : > { %2611 = vmatpush3.msra.mxu1 %v1781_v0 }
 0xaa4   : > { %2620 = vmatprep.subr.bf16.mxu1 %v2814_v3 }
 0xaa5   : > { %v2741_v1 = vpop.eup %2740 }
 0xaa6   : > { %v1772_v2 = vmul.f32 %v2741_v1, %v1766_v62 }
 0xaa8   : > { %v1774_v14 = vsub.f32 2.0, %v1772_v2 }
 0xaa9   : > { %v2743_v4 = vpop.eup %2742 }
 0xaaa   : > { %v1776_v7 = vmul.f32 %v2741_v1, %v1774_v14  ;;  %v1773_v8 = vmul.f32 %v2743_v4, %v1769_v63  ;;  %v2025_v63 = vsub.s32 3, %v2933_v9 }
 0xaac   : > { %v1778_v10 = vmul.f32 %v2737_v53, %v1776_v7  ;;  %v1775_v20 = vsub.f32 2.0, %v1773_v8  ;;  %v2026_v14 = vrot.slane %v2936_v11, %v2025_v63 }
 0xaae   : > { %v1777_v22 = vmul.f32 %v2743_v4, %v1775_v20  ;;  %2613 = vmatmul.mubr.msk.f32.vlgmr.msra.gmra.mrb[16].mxu1 %vm443_vm3, %v1778_v10  ;;  %v2704_v20 = vld [vmem:[%s2904_s16] sm:$0xff]  }
 0xaaf   : > { %2622 = vmatprep.mubr.msk.bf16.mxu1 %vm2815_vm1, %v2814_v3  ;;  %2621 = vmatpush3.bf16.msra.mxu1 %v1937_v15  ;;  %v2708_v15 = vld [vmem:[%s2904_s16 + $0x20] sm:$0xff]  }
 0xab0   : > { %v1779_v12 = vmul.f32 %v2739_v55, %v1777_v22  ;;  %2634 = vmatprep.subr.bf16.mxu1 %v2814_v3  ;;  %v2705_v22 = vld [vmem:[%s2904_s16 + $0x8] sm:$0xff]  }
 0xab2   : > { %2618 = vmatmul.mubr.msk.f32.vlgmr.msra.gmra.mrb[28].mxu0 %vm443_vm3, %v1779_v12  ;;  %v2706_v12 = vld [vmem:[%s2904_s16 + $0x10] sm:$0xff]  }
 0xab3   : > { %2630 = vmatprep.mubr.msk.bf16.mxu0 %vm2815_vm1, %v2814_v3 }
 0xb16   : > { %v1587_v16 = vpop.f32.mrb[12].mxu1 }
 0xb17   : > { %v1594_v17 = vadd.f32 %v1587_v16, %v3042_v57  ;;  %v2598_v19 = vpop.f32.mrb[13].mxu1  ;;  %v2709_v16 = vld [vmem:[%s2904_s16 + $0x28] sm:$0xff]  }
 0xb18   : > { %v1590_v21 = vpop.f32.mrb[14].mxu1  ;;  %v2711_v19 = vld [vmem:[%s2904_s16 + $0x38] sm:$0xff]  }
 0xb19   : > { %v1595_v23 = vadd.f32 %v1590_v21, %v3044_v60  ;;  %v2599_v24 = vpop.f32.mrb[15].mxu1  ;;  %v2036_v21 = vsub.s32 4, %v2933_v9 }
 0xb81   : > { %v1852_v25 = vpop.f32.mrb[16].mxu1 }
 0xb82   : > { %v2614_v26 = vpop.f32.mrb[17].mxu1 }
 0xb85   : > { %v1928_v27 = vpop.f32.mrb[28].mxu0 }
 0xb86   : > { %v1932_v28 = vpack.c.bf16 %v1928_v27, %v1852_v25  ;;  %v2619_v29 = vpop.f32.mrb[29].mxu0 }
 0xb88   : > { %2623 = vmatmul.mubr.msk.bf16.vlgmr.msra.gmra.mrb[20].mxu1 %vm443_vm3, %v1932_v28 }
 0xb89   : > { %2650 = vmatprep.mubr.msk.bf16.mxu1 %vm2815_vm1, %v2814_v3  ;;  %2635 = vmatpush3.bf16.msra.mxu1 %v2704_v20 }
 0xb8a   : > { %2636 = vmatprep.subr.bf16.mxu1 %v2814_v3 }
 0xb8d   : > { %2637 = vmatpush3.bf16.msra.mxu1 %v2705_v22 }
 0xb8e   : > { %2638 = vmatprep.subr.bf16.mxu1 %v2814_v3 }
 0xb91   : > { %2639 = vmatpush3.bf16.msra.mxu1 %v2706_v12 }
 0xb92   : > { %2640 = vmatprep.subr.bf16.mxu1 %v2814_v3 }
 0xb95   : > { %2641 = vmatpush3.bf16.msra.mxu1 %v2707_v13 }
 0xb96   : > { %2642 = vmatprep.subr.bf16.mxu1 %v2814_v3 }
 0xb99   : > { %2643 = vmatpush3.bf16.msra.mxu1 %v2708_v15 }
 0xb9a   : > { %2644 = vmatprep.subr.bf16.mxu1 %v2814_v3 }
 0xb9d   : > { %2645 = vmatpush3.bf16.msra.mxu1 %v2709_v16 }
 0xb9e   : > { %2646 = vmatprep.subr.bf16.mxu1 %v2814_v3 }
 0xc5b   : > { %v1973_v57 = vpop.f32.mrb[20].mxu1 }
 0xc5c   : > { %v1980_v32 = vadd.f32 %v1973_v57, %v1594_v17  ;;  %v2624_v33 = vpop.f32.mrb[21].mxu1  ;;  %v2710_v17 = vld [vmem:[%s2904_s16 + $0x30] sm:$0xff]  }
 0xc5d   : > { %v1976_v34 = vpop.f32.mrb[22].mxu1  ;;  %2647 = vmatpush3.bf16.msra.mxu1 %v2710_v17 }
 0xc5e   : > { %v1986_v60 = vadd.f32 %v1985_v31, %v1980_v32  ;;  %v1981_v35 = vadd.f32 %v1976_v34, %v1595_v23  ;;  %v2625_v36 = vpop.f32.mrb[23].mxu1  ;;  %2648 = vmatprep.subr.bf16.mxu1 %v2814_v3  ;;  %v2037_v23 = vrot.slane %v2936_v11, %v2036_v21 }
 0xc60   : > { %v1987_v37 = vadd.f32 %v1985_v31, %v1981_v35  ;;  %v1988_v38 = vadd.f32 %v1986_v60, %v2920_v5 }
 0xc61   : > { %2649 = vmatpush3.bf16.msra.mxu1 %v2711_v19 }
 0xc62   : > { %v1990_v39 = vsel %vm389_vm2, %v1988_v38, 0.0  ;;  %v1989_v18 = vadd.f32 %v1987_v37, %v2922_v6  ;;  %v2702_v6 = vld [vmem:[%s2899_s13] sm:$0xff]  }
 0xc63   : > { %1991 = vadd.xlane.f32.xlu0 %v1990_v39  ;;  %2627 = vmatpush3.bf16.msra.mxu0 %v2702_v6 }
 0xc64   : > { %v1993_v40 = vsel %vm389_vm2, %v1989_v18, 0.0  ;;  %2628 = vmatprep.subr.bf16.mxu0 %v2814_v3 }
 0xc65   : > { %1994 = vadd.xlane.f32.xlu1 %v1993_v40 }
 0xc67   : > { %2629 = vmatpush3.bf16.msra.mxu0 %v2703_v50 }
 0xcf0   : > { %v1992_v41 = vpop.xlane.xlu0 %1991 }
 0xcf1   : > { %v1997_v42 = vmul.f32 0.03125, %v1992_v41 }
 0xcf2   : > { %v1995_v43 = vpop.xlane.xlu1 %1994 }
 0xcf3   : > { %v1999_v44 = vsub.f32 %v1988_v38, %v1997_v42  ;;  %v1998_v45 = vmul.f32 0.03125, %v1995_v43  ;;  %v2127_v38 = vsub.s32 5, %v2933_v9 }
 0xcf5   : > { %v2000_v46 = vsub.f32 %v1989_v18, %v1998_v45  ;;  %v2001_v47 = vmul.f32 %v1999_v44, %v1999_v44  ;;  %v2128_v39 = vrot.slane %v2936_v11, %v2127_v38 }
 0xcf7   : > { %v2003_v48 = vsel %vm389_vm2, %v2001_v47, 0.0  ;;  %v2002_v5 = vmul.f32 %v2000_v46, %v2000_v46 }
 0xcf8   : > { %2004 = vadd.xlane.f32.xlu0 %v2003_v48 }
 0xcf9   : > { %v2006_v49 = vsel %vm389_vm2, %v2002_v5, 0.0 }
 0xcfc   : > { %2007 = vadd.xlane.f32.xlu0 %v2006_v49 }
 0xd85   : > { %v2005_v51 = vpop.xlane.xlu0 %2004 }
 0xd86   : > { %v2009_v52 = vmul.f32 0.03125, %v2005_v51 }
 0xd88   : > { %v2011_v53 = vadd.f32 1e-05, %v2009_v52 }
 0xd89   : > { %v2008_v54 = vpop.xlane.xlu0 %2007 }
 0xd8a   : > { %2744 = vrsqrt.f32 %v2011_v53  ;;  %v2010_v55 = vmul.f32 0.03125, %v2008_v54 }
 0xd8c   : > { %v2012_v56 = vadd.f32 1e-05, %v2010_v55 }
 0xd8e   : > { %2746 = vrsqrt.f32 %v2012_v56 }
 0xd94   : > { %v2745_v59 = vpop.eup %2744 }
 0xd95   : > { %v2015_v62 = vmul.f32 %v2745_v59, %v1999_v44 }
 0xd97   : > { %v2021_v1 = vmul.f32 %v2020_v61, %v2015_v62 }
 0xd98   : > { %v2747_v0 = vpop.eup %2746 }
 0xd99   : > { %v2016_v2 = vmul.f32 %v2747_v0, %v2000_v46  ;;  %v2027_v7 = vadd.f32 %v2026_v14, %v2021_v1  ;;  %v2248_v1 = vsub.s32 6, %v2933_v9 }
 0xd9b   : > { %v2022_v4 = vmul.f32 %v2020_v61, %v2016_v2  ;;  %v2254_v2 = vsub.s32 7, %v2933_v9 }
 0xd9d   : > { %v2028_v8 = vadd.f32 %v2026_v14, %v2022_v4  ;;  %v2249_v14 = vrot.slane %v2936_v11, %v2248_v1 }
 0xd9f   : > { %v2029_v10 = vpack.c.bf16 %v2028_v8, %v2027_v7 }
 0xda1   : > { %2631 = vmatmul.mubr.msk.bf16.vlgmr.msra.gmra.mrb[32].mxu0 %vm389_vm2, %v2029_v10 }
 0xe74   : > { %v2087_v24 = vpop.f32.mrb[32].mxu0 }
 0xe75   : > { %v2088_v25 = vadd.f32 %v2087_v24, %v2037_v23  ;;  %v2632_v26 = vpop.f32.mrb[33].mxu0 }
 0xe76   : > { %v2090_v27 = vpop.f32.mrb[34].mxu0 }
 0xe77   : > { %v2440_v28 = vmul.f32 -1.442695, %v2088_v25  ;;  %v2091_v29 = vadd.f32 %v2090_v27, %v2037_v23  ;;  %v2633_v30 = vpop.f32.mrb[35].mxu0 }
 0xe79   : > { %2748 = vpow2.f32 %v2440_v28  ;;  %v2441_v31 = vmul.f32 -1.442695, %v2091_v29 }
 0xe7b   : > { %2750 = vpow2.f32 %v2441_v31 }
 0xe83   : > { %v2749_v57 = vpop.eup %2748 }
 0xe84   : > { %v2100_v32 = vadd.f32 1.0, %v2749_v57 }
 0xe85   : > { %v2751_v33 = vpop.eup %2750 }
 0xe86   : > { %2752 = vrcp.f32 %v2100_v32  ;;  %v2101_v3 = vadd.f32 1.0, %v2751_v33 }
 0xe88   : > { %2754 = vrcp.f32 %v2101_v3 }
 0xe90   : > { %v2753_v34 = vpop.eup %2752 }
 0xe91   : > { %v2106_v35 = vmul.f32 %v2753_v34, %v2088_v25 }
 0xe92   : > { %v2755_v60 = vpop.eup %2754 }
 0xe93   : > { %v2107_v36 = vmul.f32 %v2755_v60, %v2091_v29 }
 0xe95   : > { %v2108_v37 = vpack.c.bf16 %v2107_v36, %v2106_v35 }
 0xe97   : > { %2651 = vmatmul.mubr.bf16.vlgmr.msra.gmra.mrb[24].mxu1 %v2108_v37 }
 0xf6a   : > { %v2211_v18 = vpop.f32.mrb[24].mxu1 }
 0xf6b   : > { %v2212_v40 = vadd.f32 %v2211_v18, %v2128_v39  ;;  %v2652_v41 = vpop.f32.mrb[25].mxu1 }
 0xf6c   : > { %v2214_v42 = vpop.f32.mrb[26].mxu1 }
 0xf6d   : > { %v2215_v43 = vadd.f32 %v2214_v42, %v2128_v39  ;;  %v2653_v44 = vpop.f32.mrb[27].mxu1  ;;  %v2218_v45 = vadd.f32 %v2212_v40, %v2027_v7  ;;  %v2255_v7 = vrot.slane %v2936_v11, %v2254_v2 }
 0xf6f   : > { %v2220_v46 = vsel %vm389_vm2, %v2218_v45, 0.0  ;;  %v2219_v47 = vadd.f32 %v2215_v43, %v2028_v8 }
 0xf70   : > { %2221 = vadd.xlane.f32.xlu0 %v2220_v46 }
 0xf71   : > { %v2223_v48 = vsel %vm389_vm2, %v2219_v47, 0.0 }
 0xf74   : > { %2224 = vadd.xlane.f32.xlu0 %v2223_v48 }
 0xffd   : > { %v2222_v5 = vpop.xlane.xlu0 %2221 }
 0xffe   : > { %v2226_v49 = vmul.f32 0.03125, %v2222_v5 }
0x1000   : > { %v2228_v6 = vsub.f32 %v2218_v45, %v2226_v49 }
0x1001   : > { %v2225_v50 = vpop.xlane.xlu0 %2224 }
0x1002   : > { %v2227_v51 = vmul.f32 0.03125, %v2225_v50  ;;  %v2230_v52 = vmul.f32 %v2228_v6, %v2228_v6 }
0x1004   : > { %v2229_v53 = vsub.f32 %v2219_v47, %v2227_v51  ;;  %v2232_v54 = vsel %vm389_vm2, %v2230_v52, 0.0 }
0x1005   : > { %2233 = vadd.xlane.f32.xlu1 %v2232_v54 }
0x1006   : > { %v2231_v55 = vmul.f32 %v2229_v53, %v2229_v53 }
0x1008   : > { %v2235_v56 = vsel %vm389_vm2, %v2231_v55, 0.0 }
0x1009   : > { %2236 = vadd.xlane.f32.xlu0 %v2235_v56 }
0x1092   : > { %v2234_v58 = vpop.xlane.xlu1 %2233 }
0x1093   : > { %v2238_v59 = vmul.f32 0.03125, %v2234_v58 }
0x1095   : > { %v2240_v61 = vadd.f32 1e-05, %v2238_v59 }
0x1096   : > { %v2237_v62 = vpop.xlane.xlu0 %2236 }
0x1097   : > { %2756 = vrsqrt.f32 %v2240_v61  ;;  %v2239_v63 = vmul.f32 0.03125, %v2237_v62 }
0x1099   : > { %v2241_v0 = vadd.f32 1e-05, %v2239_v63 }
0x109b   : > { %2758 = vrsqrt.f32 %v2241_v0 }
0x10a1   : > { %v2757_v4 = vpop.eup %2756 }
0x10a2   : > { %v2244_v8 = vmul.f32 %v2757_v4, %v2228_v6 }
0x10a4   : > { %v2250_v10 = vmul.f32 %v2249_v14, %v2244_v8 }
0x10a5   : > { %v2759_v20 = vpop.eup %2758 }
0x10a6   : > { %v2256_v22 = vadd.f32 %v2255_v7, %v2250_v10  ;;  %v2245_v12 = vmul.f32 %v2759_v20, %v2229_v53  ;;  %2263 = sbr.rel (%p2450_p6) target bundleno = 4269 (0x10ad), region = 52 }
0x10a8   : > { %2258 = vst.msk [vmem:[#allocation2] sm:$0xff] %vm389_vm2, %v2256_v22  ;;  %v2251_v13 = vmul.f32 %v2249_v14, %v2245_v12  ;;  %2264 = vst.msk [vmem:[#allocation3] sm:$0xff] (!%p2450_p6), %vm389_vm2, %v2256_v22 }
0x10aa   : > { %v2257_v15 = vadd.f32 %v2255_v7, %v2251_v13 }
0x10ac   : > { %2259 = vst.msk [vmem:[#allocation2 + $0x8] sm:$0xff] %vm389_vm2, %v2257_v15  ;;  %2265 = vst.msk [vmem:[#allocation3 + $0x8] sm:$0xff] (!%p2450_p6), %vm389_vm2, %v2257_v15 }
0x10ad PF: > { %p3158_p7 = scmp.eq.s32.totalorder %s2391_s24, 1  ;;  %s2827_s13 = smov [#allocation3]  }
0x10ae   : > { %s2275_s16 = sshll.u32 %s2827_s13, 4  ;;  %s2276_s16 = int_to_ptr.vmem [resolvable:$true] %s2275_s16 }
0x10af   : > { %s2760_s20 = scalar_lea.vmem %s2276_s16, 256  ;;  %p2767_p11 = scmp.lt.s32.totalorder %s2276_s16, %s2276_s16 }
0x10b0   : > { %p2761_p8 = scmp.ne.s32.totalorder %s2276_s16, %s2760_s20  ;;  %p2768_p12 = scmp.lt.s32.totalorder %s2760_s20, %s2760_s20 }
0x10b2   : > { %p2762_p9 = pnand %p2761_p8, %p3158_p7  ;;  %p2769_p13 = por %p2768_p12, %p2767_p11 }
0x10b4   : > { %p2763_p10 = pneg %p2762_p9 }
0x10b6   : > { %p2770_p0 = pnand %p2769_p13, %p2763_p10 }
0x10b8   : > { %2773 = shalt.err (!%p2770_p0)
}
0x10b9   : > { %s2774_s24 = scalar_lea.hbm %s3199_s6, 256 }
0x10ba   : > { %p2775_p1 = scmp.ne.s32.totalorder %s3199_s6, %s2774_s24  ;;  %p2780_p4 = scmp.lt.u32.totalorder %s2774_s24, %s3199_s6 }
0x10bc   : > { %p2776_p2 = pnand %p2775_p1, %p3158_p7 }
0x10be   : > { %p2777_p3 = pneg %p2776_p2 }
0x10c0   : > { %p2782_p5 = pnand %p2780_p4, %p2777_p3 }
0x10c2   : > { %2785 = shalt.err (!%p2782_p5)
}
0x10c3   : > { %s2828_s28 = smov 128   ;;  %s2829_s7 = smov 8  }
0x10c4   : > { %2655 = dma.vmem_to_hbm [thread:$0]  (%p3158_p7), %s2276_s16, 256, %s3199_s6, [#allocation4], %s2828_s28, %s2828_s28, %s2829_s7  }
0x10c5   : > { %2799 = dma.done.wait (%p3158_p7), [#allocation4], 256  }
0x10c6   : > { %2801 = vsyncadd (%p3158_p7), [#allocation4], 4294967040 }
0x10c7 PF: > { %s17_s23 = sadd.s32 1, %s2812_s23   ;;  %s3201_s21 = smov %s2808_s22 }
0x10c8   : > { %p14_p6 = scmp.ge.s32.totalorder %s17_s23, 4   ;;  %s3202_s22 = smov %s3204_s25 }
0x10ca   :  { %16 = sbr.rel (!%p14_p6) target bundleno = 2 (0x2), region = 95 }
0x10d1   :  { %2291 = vsyncpa [#allocation4], 1 }
0x10d2   :  { %2293 = vsyncpa [#allocation4 + $0x1], 1 }

</bundles_post_ra>
